<compile_context>
chip_gen: v6e
topology: v6e:2x2x1
jax: 0.10.0
libtpu: 0.0.40
codegen_flags: <defaults>
</compile_context>

<pallas_src>
import math

import jax
import jax.numpy as jnp
from jax.experimental import pallas as pl
from jax.experimental.pallas import tpu as pltpu

C_IN = 2048   # extractor input channels
OUT_D = 256   # nn.Linear(2048, 256)


def extractor_kernel(pooled_ref, w_ref, b_ref, o_ref):
    # Dropout(p=0.1) is identity in eval/inference mode.
    # TODO(synk): training-mode dropout would use pltpu.prng_seed + prng_random_bits;
    # not emitted here since the module's forward is evaluated at inference.
    # Linear: y = pooled @ W + b   (W stored (in, out), i.e. PyTorch weight.T)
    o_ref[...] = (
        jnp.dot(pooled_ref[...], w_ref[...], preferred_element_type=jnp.float32)
        + b_ref[...]
    )


def _extractor_linear(pooled, w, b):
    n = pooled.shape[0]
    return pl.pallas_call(
        extractor_kernel,
        out_shape=jax.ShapeDtypeStruct((n, OUT_D), jnp.float32),
        in_specs=[pl.BlockSpec(memory_space=pltpu.MemorySpace.VMEM)] * 3,
        out_specs=pl.BlockSpec(memory_space=pltpu.MemorySpace.VMEM),
    )(pooled, w, b.reshape(1, OUT_D))


@jax.jit
def extractor_forward(x_nchw, w, b):
    # AdaptiveAvgPool2d(1) + reshape(-1, 2048): spatial mean over (H, W) computed
    # by XLA on the contiguous NCHW layout (no transpose, no large HBM
    # round-trip); the kernel consumes only the (N, 2048) pooled tensor.
    pooled = jnp.mean(x_nchw, axis=(2, 3))
    return _extractor_linear(pooled, w, b)


def ref_forward(x_nchw, w, b):
    # Pure-JAX reference at highest precision (ground truth for validation).
    pooled = jnp.mean(x_nchw, axis=(2, 3))
    return jnp.dot(pooled, w, precision=jax.lax.Precision.HIGHEST) + b


if __name__ == "__main__":
    key = jax.random.PRNGKey(0)
    kx, kw, kb = jax.random.split(key, 3)

    # Small shapes consistent with the module: batch 4, 2048 channels, 4x4 spatial.
    N, H, W = 4, 4, 4
    x = jax.random.normal(kx, (N, C_IN, H, W), jnp.float32)

    # PyTorch nn.Linear default init; weight kept as (in, out) = PyTorch weight.T.
    bound = 1.0 / math.sqrt(C_IN)
    w = jax.random.uniform(kw, (C_IN, OUT_D), jnp.float32, -bound, bound)
    b = jax.random.uniform(kb, (OUT_D,), jnp.float32, -bound, bound)

    out = jax.block_until_ready(extractor_forward(x, w, b))
    ref = jax.block_until_ready(ref_forward(x, w, b))

    assert out.shape == (N, OUT_D), out.shape
    err = float(jnp.max(jnp.abs(out - ref)))
    # Default MXU precision vs. f32 HIGHEST reference -> relaxed tolerance.
    assert err < 1e-2, f"mismatch vs reference: {err}"

    print("KERNEL_OK")
</pallas_src>

<mosaic_0001>
module attributes {stable_mosaic.version = 11 : i64} {
  func.func @extractor_kernel(%arg0: memref<4x2048xf32, #tpu.memory_space<vmem>>, %arg1: memref<2048x256xf32, #tpu.memory_space<vmem>>, %arg2: memref<1x256xf32, #tpu.memory_space<vmem>>, %arg3: memref<4x256xf32, #tpu.memory_space<vmem>>) attributes {dimension_semantics = [], scalar_prefetch = 0 : i64, scratch_operands = 0 : i64, tpu.core_type = #tpu.core_type<tc>} {
    %c0 = arith.constant 0 : index
    %c0_0 = arith.constant 0 : index
    %0 = vector.load %arg0[%c0, %c0_0] : memref<4x2048xf32, #tpu.memory_space<vmem>>, vector<4x2048xf32>
    %c0_1 = arith.constant 0 : index
    %c0_2 = arith.constant 0 : index
    %1 = vector.load %arg1[%c0_1, %c0_2] : memref<2048x256xf32, #tpu.memory_space<vmem>>, vector<2048x256xf32>
    %cst = arith.constant dense<0.000000e+00> : vector<4x256xf32>
    %2 = tpu.matmul %0, %1, %cst {dimension_numbers = #tpu.dot_dimension_numbers<[1], [0], [0], [1], [0, 0, 1, 1], [], []>} : vector<4x2048xf32>, vector<2048x256xf32>, vector<4x256xf32> -> vector<4x256xf32>
    %c0_3 = arith.constant 0 : index
    %c0_4 = arith.constant 0 : index
    %3 = vector.load %arg2[%c0_3, %c0_4] : memref<1x256xf32, #tpu.memory_space<vmem>>, vector<1x256xf32>
    %4 = vector.broadcast %3 : vector<1x256xf32> to vector<4x256xf32>
    %5 = arith.addf %2, %4 : vector<4x256xf32>
    %c0_5 = arith.constant 0 : index
    %c0_6 = arith.constant 0 : index
    %6 = vector.load %arg3[%c0_5, %c0_6] : memref<4x256xf32, #tpu.memory_space<vmem>>, vector<4x256xf32>
    tpu.vector_store %arg3[%c0_5, %c0_6], %5 {strides = array<i32>} : memref<4x256xf32, #tpu.memory_space<vmem>>, vector<4x256xf32>,
    return
  }
}

</mosaic_0001>

<bundles_post_ra>
// kernel: extractor_forward.1
= control target key start
LH: loop header
LB: loop body
LE: loop exit
PB: predicated region body
PF: predicated region fallthrough
CT: control target
= control target key end

     0   :  { %8 = vsyncpa [#allocation3], 0  ;;  %s1323_s0 = inlined_call_operand.vmem [shape: f32[4,2048], index: 0, kind: input, shape index: {}]   ;;  %s1324_s1 = inlined_call_operand.hbm [shape: f32[2048,256], index: 1, kind: input, shape index: {}]   ;;  %s1325_s2 = inlined_call_operand.hbm [shape: f32[1,256], index: 2, kind: input, shape index: {}]   ;;  %s1326_s3 = inlined_call_operand.hbm [shape: f32[4,256], index: 3, kind: output, shape index: {}]  }
   0x1   :  { %9 = vsyncpa [#allocation6], 0 }
   0x2   :  { %10 = vsyncpa [#allocation4], 0  ;;  %s1265_s12 = smov [#allocation2]  }
   0x3   :  { %s18_s13 = sshll.u32 %s1265_s12, 4  ;;  %s19_s13 = int_to_ptr.vmem [resolvable:$true] %s18_s13 }
   0x4   :  { %s1207_s14 = scalar_lea.vmem %s19_s13, 65536  ;;  %p1212_p1 = scmp.lt.s32.totalorder %s19_s13, %s19_s13 }
   0x5   :  { %p1208_p0 = scmp.ne.s32.totalorder %s19_s13, %s1207_s14  ;;  %p1213_p2 = scmp.lt.s32.totalorder %s1207_s14, %s1207_s14 }
   0x7   :  { %p1214_p3 = por %p1213_p2, %p1212_p1 }
   0x9   :  { %p1215_p4 = pnand %p1214_p3, %p1208_p0 }
   0xb   :  { %1218 = shalt.err (!%p1215_p4)
}
   0xc   :  { %s1266_s15 = smov 256   ;;  %s1267_s16 = smov 16  }
   0xd   :  { %24 = dma.hbm_to_vmem [thread:$0]  %s1324_s1, 65536, %s19_s13, [#allocation3], %s1266_s15, %s1266_s15, %s1267_s16  }
   0xe   :  { %s1268_s19 = smov [#allocation5]  }
   0xf   :  { %s31_s20 = sshll.u32 %s1268_s19, 4  ;;  %s32_s20 = int_to_ptr.vmem [resolvable:$true] %s31_s20 }
  0x10   :  { %s1227_s21 = scalar_lea.vmem %s32_s20, 32  ;;  %p1232_p6 = scmp.lt.s32.totalorder %s32_s20, %s32_s20 }
  0x11   :  { %p1228_p5 = scmp.ne.s32.totalorder %s32_s20, %s1227_s21  ;;  %p1233_p7 = scmp.lt.s32.totalorder %s1227_s21, %s1227_s21 }
  0x13   :  { %p1234_p8 = por %p1233_p7, %p1232_p6 }
  0x15   :  { %p1235_p9 = pnand %p1234_p8, %p1228_p5 }
  0x17   :  { %1238 = shalt.err (!%p1235_p9)
}
  0x18   :  { %34 = dma.hbm_to_vmem [thread:$0]  %s1325_s2, 32, %s32_s20, [#allocation6]  }
  0x19   :  { %1259 = dma.done.wait [#allocation3], 65536  }
  0x1a   :  { %1260 = vsyncadd [#allocation3], 4294901760 }
  0x1b   :  { %1261 = dma.done.wait [#allocation6], 32  }
  0x1c   :  { %1262 = vsyncadd [#allocation6], 4294967264  ;;  %v80_v0 = vld [vmem:[#allocation2 + $0xf8] sm:$0xff]  ;;  %v79_v2 = vld [vmem:[#allocation2 + $0xf0] sm:$0xff] }
  0x1d   :  { %v144_v1 = vld [vmem:[#allocation2 + $0x2f8] sm:$0xff]  ;;  %597 = vmatprep.subr.mxu0 %v80_v0  ;;  %v143_v3 = vld [vmem:[#allocation2 + $0x2f0] sm:$0xff]  ;;  %v78_v4 = vld [vmem:[#allocation2 + $0xe8] sm:$0xff] }
  0x1e   :  { %668 = vmatprep.subr.mxu1 %v144_v1  ;;  %v142_v5 = vld [vmem:[#allocation2 + $0x2e8] sm:$0xff]  ;;  %598 = vmatpush1.msra.mxu0 %v79_v2  ;;  %v77_v6 = vld [vmem:[#allocation2 + $0xe0] sm:$0xff]  ;;  %v76_v8 = vld [vmem:[#allocation2 + $0xd8] sm:$0xff] }
  0x1f   :  { %669 = vmatpush1.msra.mxu1 %v143_v3  ;;  %v141_v7 = vld [vmem:[#allocation2 + $0x2e0] sm:$0xff]  ;;  %599 = vmatprep.subr.mxu0 %v78_v4  ;;  %v140_v9 = vld [vmem:[#allocation2 + $0x2d8] sm:$0xff]  ;;  %v75_v10 = vld [vmem:[#allocation2 + $0xd0] sm:$0xff] }
  0x20   :  { %670 = vmatprep.subr.mxu1 %v142_v5  ;;  %v139_v11 = vld [vmem:[#allocation2 + $0x2d0] sm:$0xff]  ;;  %600 = vmatpush1.msra.mxu0 %v77_v6  ;;  %v74_v12 = vld [vmem:[#allocation2 + $0xc8] sm:$0xff]  ;;  %v73_v14 = vld [vmem:[#allocation2 + $0xc0] sm:$0xff] }
  0x21   :  { %671 = vmatpush1.msra.mxu1 %v141_v7  ;;  %v138_v13 = vld [vmem:[#allocation2 + $0x2c8] sm:$0xff]  ;;  %601 = vmatprep.subr.mxu0 %v76_v8  ;;  %v137_v15 = vld [vmem:[#allocation2 + $0x2c0] sm:$0xff]  ;;  %v72_v16 = vld [vmem:[#allocation2 + $0xb8] sm:$0xff] }
  0x22   :  { %672 = vmatprep.subr.mxu1 %v140_v9  ;;  %602 = vmatpush1.msra.mxu0 %v75_v10  ;;  %v136_v17 = vld [vmem:[#allocation2 + $0x2b8] sm:$0xff]  ;;  %v71_v18 = vld [vmem:[#allocation2 + $0xb0] sm:$0xff]  ;;  %v70_v20 = vld [vmem:[#allocation2 + $0xa8] sm:$0xff] }
  0x23   :  { %673 = vmatpush1.msra.mxu1 %v139_v11  ;;  %603 = vmatprep.subr.mxu0 %v74_v12  ;;  %v135_v19 = vld [vmem:[#allocation2 + $0x2b0] sm:$0xff]  ;;  %v134_v21 = vld [vmem:[#allocation2 + $0x2a8] sm:$0xff]  ;;  %v69_v22 = vld [vmem:[#allocation2 + $0xa0] sm:$0xff] }
  0x24   :  { %674 = vmatprep.subr.mxu1 %v138_v13  ;;  %604 = vmatpush1.msra.mxu0 %v73_v14  ;;  %v133_v23 = vld [vmem:[#allocation2 + $0x2a0] sm:$0xff]  ;;  %v68_v24 = vld [vmem:[#allocation2 + $0x98] sm:$0xff]  ;;  %v67_v26 = vld [vmem:[#allocation2 + $0x90] sm:$0xff] }
  0x25   :  { %675 = vmatpush1.msra.mxu1 %v137_v15  ;;  %605 = vmatprep.subr.mxu0 %v72_v16  ;;  %v132_v25 = vld [vmem:[#allocation2 + $0x298] sm:$0xff]  ;;  %v131_v27 = vld [vmem:[#allocation2 + $0x290] sm:$0xff]  ;;  %v66_v28 = vld [vmem:[#allocation2 + $0x88] sm:$0xff] }
  0x26   :  { %676 = vmatprep.subr.mxu1 %v136_v17  ;;  %606 = vmatpush1.msra.mxu0 %v71_v18  ;;  %v130_v29 = vld [vmem:[#allocation2 + $0x288] sm:$0xff]  ;;  %v65_v30 = vld [vmem:[#allocation2 + $0x80] sm:$0xff]  ;;  %v64_v32 = vld [vmem:[#allocation2 + $0x78] sm:$0xff] }
  0x27   :  { %677 = vmatpush1.msra.mxu1 %v135_v19  ;;  %607 = vmatprep.subr.mxu0 %v70_v20  ;;  %v129_v31 = vld [vmem:[#allocation2 + $0x280] sm:$0xff]  ;;  %v128_v33 = vld [vmem:[#allocation2 + $0x278] sm:$0xff]  ;;  %v63_v34 = vld [vmem:[#allocation2 + $0x70] sm:$0xff] }
  0x28   :  { %678 = vmatprep.subr.mxu1 %v134_v21  ;;  %608 = vmatpush1.msra.mxu0 %v69_v22  ;;  %v127_v35 = vld [vmem:[#allocation2 + $0x270] sm:$0xff]  ;;  %v62_v36 = vld [vmem:[#allocation2 + $0x68] sm:$0xff]  ;;  %v61_v38 = vld [vmem:[#allocation2 + $0x60] sm:$0xff] }
  0x29   :  { %679 = vmatpush1.msra.mxu1 %v133_v23  ;;  %609 = vmatprep.subr.mxu0 %v68_v24  ;;  %v126_v37 = vld [vmem:[#allocation2 + $0x268] sm:$0xff]  ;;  %v125_v39 = vld [vmem:[#allocation2 + $0x260] sm:$0xff]  ;;  %v60_v40 = vld [vmem:[#allocation2 + $0x58] sm:$0xff] }
  0x2a   :  { %680 = vmatprep.subr.mxu1 %v132_v25  ;;  %610 = vmatpush1.msra.mxu0 %v67_v26  ;;  %v124_v41 = vld [vmem:[#allocation2 + $0x258] sm:$0xff]  ;;  %v59_v42 = vld [vmem:[#allocation2 + $0x50] sm:$0xff]  ;;  %v58_v44 = vld [vmem:[#allocation2 + $0x48] sm:$0xff] }
  0x2b   :  { %681 = vmatpush1.msra.mxu1 %v131_v27  ;;  %611 = vmatprep.subr.mxu0 %v66_v28  ;;  %v123_v43 = vld [vmem:[#allocation2 + $0x250] sm:$0xff]  ;;  %v122_v45 = vld [vmem:[#allocation2 + $0x248] sm:$0xff]  ;;  %v57_v46 = vld [vmem:[#allocation2 + $0x40] sm:$0xff] }
  0x2c   :  { %682 = vmatprep.subr.mxu1 %v130_v29  ;;  %612 = vmatpush1.msra.mxu0 %v65_v30  ;;  %v121_v47 = vld [vmem:[#allocation2 + $0x240] sm:$0xff]  ;;  %v56_v48 = vld [vmem:[#allocation2 + $0x38] sm:$0xff]  ;;  %v55_v50 = vld [vmem:[#allocation2 + $0x30] sm:$0xff] }
  0x2d   :  { %683 = vmatpush1.msra.mxu1 %v129_v31  ;;  %613 = vmatprep.subr.mxu0 %v64_v32  ;;  %v120_v49 = vld [vmem:[#allocation2 + $0x238] sm:$0xff]  ;;  %v119_v51 = vld [vmem:[#allocation2 + $0x230] sm:$0xff]  ;;  %v54_v52 = vld [vmem:[#allocation2 + $0x28] sm:$0xff] }
  0x2e   :  { %684 = vmatprep.subr.mxu1 %v128_v33  ;;  %614 = vmatpush1.msra.mxu0 %v63_v34  ;;  %v118_v53 = vld [vmem:[#allocation2 + $0x228] sm:$0xff]  ;;  %v53_v54 = vld [vmem:[#allocation2 + $0x20] sm:$0xff]  ;;  %v52_v56 = vld [vmem:[#allocation2 + $0x18] sm:$0xff] }
  0x2f   :  { %685 = vmatpush1.msra.mxu1 %v127_v35  ;;  %615 = vmatprep.subr.mxu0 %v62_v36  ;;  %v117_v55 = vld [vmem:[#allocation2 + $0x220] sm:$0xff]  ;;  %v116_v57 = vld [vmem:[#allocation2 + $0x218] sm:$0xff]  ;;  %v51_v58 = vld [vmem:[#allocation2 + $0x10] sm:$0xff] }
  0x30   :  { %686 = vmatprep.subr.mxu1 %v126_v37  ;;  %616 = vmatpush1.msra.mxu0 %v61_v38  ;;  %v115_v59 = vld [vmem:[#allocation2 + $0x210] sm:$0xff]  ;;  %v50_v60 = vld [vmem:[#allocation2 + $0x8] sm:$0xff]  ;;  %v49_v62 = vld [vmem:[#allocation2] sm:$0xff] }
  0x31   :  { %687 = vmatpush1.msra.mxu1 %v125_v39  ;;  %617 = vmatprep.subr.mxu0 %v60_v40  ;;  %v114_v61 = vld [vmem:[#allocation2 + $0x208] sm:$0xff]  ;;  %v113_v63 = vld [vmem:[#allocation2 + $0x200] sm:$0xff]  ;;  %v112_v0 = vld [vmem:[#allocation2 + $0x1f8] sm:$0xff] }
  0x32   :  { %688 = vmatprep.subr.mxu1 %v124_v41  ;;  %618 = vmatpush1.msra.mxu0 %v59_v42  ;;  %v176_v1 = vld [vmem:[#allocation2 + $0x3f8] sm:$0xff]  ;;  %v111_v2 = vld [vmem:[#allocation2 + $0x1f0] sm:$0xff]  ;;  %v110_v4 = vld [vmem:[#allocation2 + $0x1e8] sm:$0xff] }
  0x33   :  { %689 = vmatpush1.msra.mxu1 %v123_v43  ;;  %619 = vmatprep.subr.mxu0 %v58_v44  ;;  %v175_v3 = vld [vmem:[#allocation2 + $0x3f0] sm:$0xff]  ;;  %v174_v5 = vld [vmem:[#allocation2 + $0x3e8] sm:$0xff]  ;;  %v109_v6 = vld [vmem:[#allocation2 + $0x1e0] sm:$0xff] }
  0x34   :  { %690 = vmatprep.subr.mxu1 %v122_v45  ;;  %620 = vmatpush1.msra.mxu0 %v57_v46  ;;  %v173_v7 = vld [vmem:[#allocation2 + $0x3e0] sm:$0xff]  ;;  %v108_v8 = vld [vmem:[#allocation2 + $0x1d8] sm:$0xff]  ;;  %v107_v10 = vld [vmem:[#allocation2 + $0x1d0] sm:$0xff] }
  0x35   :  { %691 = vmatpush1.msra.mxu1 %v121_v47  ;;  %621 = vmatprep.subr.mxu0 %v56_v48  ;;  %v172_v9 = vld [vmem:[#allocation2 + $0x3d8] sm:$0xff]  ;;  %v171_v11 = vld [vmem:[#allocation2 + $0x3d0] sm:$0xff]  ;;  %v106_v12 = vld [vmem:[#allocation2 + $0x1c8] sm:$0xff] }
  0x36   :  { %692 = vmatprep.subr.mxu1 %v120_v49  ;;  %622 = vmatpush1.msra.mxu0 %v55_v50  ;;  %v170_v13 = vld [vmem:[#allocation2 + $0x3c8] sm:$0xff]  ;;  %v105_v14 = vld [vmem:[#allocation2 + $0x1c0] sm:$0xff]  ;;  %v104_v16 = vld [vmem:[#allocation2 + $0x1b8] sm:$0xff] }
  0x37   :  { %693 = vmatpush1.msra.mxu1 %v119_v51  ;;  %623 = vmatprep.subr.mxu0 %v54_v52  ;;  %v169_v15 = vld [vmem:[#allocation2 + $0x3c0] sm:$0xff]  ;;  %v168_v17 = vld [vmem:[#allocation2 + $0x3b8] sm:$0xff]  ;;  %v103_v18 = vld [vmem:[#allocation2 + $0x1b0] sm:$0xff] }
  0x38   :  { %694 = vmatprep.subr.mxu1 %v118_v53  ;;  %624 = vmatpush1.msra.mxu0 %v53_v54  ;;  %v167_v19 = vld [vmem:[#allocation2 + $0x3b0] sm:$0xff]  ;;  %v102_v20 = vld [vmem:[#allocation2 + $0x1a8] sm:$0xff]  ;;  %v101_v22 = vld [vmem:[#allocation2 + $0x1a0] sm:$0xff] }
  0x39   :  { %695 = vmatpush1.msra.mxu1 %v117_v55  ;;  %625 = vmatprep.subr.mxu0 %v52_v56  ;;  %v166_v21 = vld [vmem:[#allocation2 + $0x3a8] sm:$0xff]  ;;  %v165_v23 = vld [vmem:[#allocation2 + $0x3a0] sm:$0xff]  ;;  %v100_v24 = vld [vmem:[#allocation2 + $0x198] sm:$0xff] }
  0x3a   :  { %696 = vmatprep.subr.mxu1 %v116_v57  ;;  %626 = vmatpush1.msra.mxu0 %v51_v58  ;;  %v164_v25 = vld [vmem:[#allocation2 + $0x398] sm:$0xff]  ;;  %v99_v26 = vld [vmem:[#allocation2 + $0x190] sm:$0xff]  ;;  %v98_v28 = vld [vmem:[#allocation2 + $0x188] sm:$0xff] }
  0x3b   :  { %697 = vmatpush1.msra.mxu1 %v115_v59  ;;  %627 = vmatprep.subr.mxu0 %v50_v60  ;;  %v163_v27 = vld [vmem:[#allocation2 + $0x390] sm:$0xff]  ;;  %v162_v29 = vld [vmem:[#allocation2 + $0x388] sm:$0xff]  ;;  %v97_v30 = vld [vmem:[#allocation2 + $0x180] sm:$0xff] }
  0x3c   :  { %698 = vmatprep.subr.mxu1 %v114_v61  ;;  %628 = vmatpush1.msra.mxu0 %v49_v62  ;;  %v161_v31 = vld [vmem:[#allocation2 + $0x380] sm:$0xff]  ;;  %v96_v32 = vld [vmem:[#allocation2 + $0x178] sm:$0xff]  ;;  %v95_v34 = vld [vmem:[#allocation2 + $0x170] sm:$0xff] }
  0x3d   :  { %699 = vmatpush1.msra.mxu1 %v113_v63  ;;  %629 = vmatprep.subr.mxu0 %v112_v0  ;;  %v160_v33 = vld [vmem:[#allocation2 + $0x378] sm:$0xff]  ;;  %v159_v35 = vld [vmem:[#allocation2 + $0x370] sm:$0xff]  ;;  %v94_v36 = vld [vmem:[#allocation2 + $0x168] sm:$0xff] }
  0x3e   :  { %700 = vmatprep.subr.mxu1 %v176_v1  ;;  %630 = vmatpush2.msra.mxu0 %v111_v2  ;;  %v158_v37 = vld [vmem:[#allocation2 + $0x368] sm:$0xff]  ;;  %v93_v38 = vld [vmem:[#allocation2 + $0x160] sm:$0xff]  ;;  %v92_v40 = vld [vmem:[#allocation2 + $0x158] sm:$0xff] }
  0x3f   :  { %701 = vmatpush2.msra.mxu1 %v175_v3  ;;  %631 = vmatprep.subr.mxu0 %v110_v4  ;;  %v157_v39 = vld [vmem:[#allocation2 + $0x360] sm:$0xff]  ;;  %v156_v41 = vld [vmem:[#allocation2 + $0x358] sm:$0xff]  ;;  %v91_v42 = vld [vmem:[#allocation2 + $0x150] sm:$0xff] }
  0x40   :  { %702 = vmatprep.subr.mxu1 %v174_v5  ;;  %632 = vmatpush2.msra.mxu0 %v109_v6  ;;  %v155_v43 = vld [vmem:[#allocation2 + $0x350] sm:$0xff]  ;;  %v90_v44 = vld [vmem:[#allocation2 + $0x148] sm:$0xff]  ;;  %v89_v46 = vld [vmem:[#allocation2 + $0x140] sm:$0xff] }
  0x41   :  { %703 = vmatpush2.msra.mxu1 %v173_v7  ;;  %633 = vmatprep.subr.mxu0 %v108_v8  ;;  %v154_v45 = vld [vmem:[#allocation2 + $0x348] sm:$0xff]  ;;  %v153_v47 = vld [vmem:[#allocation2 + $0x340] sm:$0xff]  ;;  %v88_v48 = vld [vmem:[#allocation2 + $0x138] sm:$0xff] }
  0x42   :  { %704 = vmatprep.subr.mxu1 %v172_v9  ;;  %634 = vmatpush2.msra.mxu0 %v107_v10  ;;  %v152_v49 = vld [vmem:[#allocation2 + $0x338] sm:$0xff]  ;;  %v87_v50 = vld [vmem:[#allocation2 + $0x130] sm:$0xff]  ;;  %v86_v52 = vld [vmem:[#allocation2 + $0x128] sm:$0xff] }
  0x43   :  { %705 = vmatpush2.msra.mxu1 %v171_v11  ;;  %635 = vmatprep.subr.mxu0 %v106_v12  ;;  %v151_v51 = vld [vmem:[#allocation2 + $0x330] sm:$0xff]  ;;  %v150_v53 = vld [vmem:[#allocation2 + $0x328] sm:$0xff]  ;;  %v85_v54 = vld [vmem:[#allocation2 + $0x120] sm:$0xff] }
  0x44   :  { %706 = vmatprep.subr.mxu1 %v170_v13  ;;  %636 = vmatpush2.msra.mxu0 %v105_v14  ;;  %v149_v55 = vld [vmem:[#allocation2 + $0x320] sm:$0xff]  ;;  %v84_v57 = vld [vmem:[#allocation2 + $0x118] sm:$0xff]  ;;  %v83_v59 = vld [vmem:[#allocation2 + $0x110] sm:$0xff] }
  0x45   :  { %707 = vmatpush2.msra.mxu1 %v169_v15  ;;  %637 = vmatprep.subr.mxu0 %v104_v16  ;;  %v41_v56 = vld [vmem:[%s1323_s0] sm:$0xff]  ;;  %v148_v58 = vld [vmem:[#allocation2 + $0x318] sm:$0xff]  ;;  %v147_v60 = vld [vmem:[#allocation2 + $0x310] sm:$0xff] }
  0x46   :  { %708 = vmatprep.subr.mxu1 %v168_v17  ;;  %638 = vmatpush2.msra.mxu0 %v103_v18  ;;  %v42_v61 = vld [vmem:[%s1323_s0 + $0x8] sm:$0xff]  ;;  %v581_v0 = vcombine.high %v41_v56, %v41_v56  ;;  %v81_v1 = vld [vmem:[#allocation2 + $0x100] sm:$0xff]  ;;  %v208_v4 = vld [vmem:[#allocation2 + $0x4f8] sm:$0xff] }
  0x47   :  { %709 = vmatpush2.msra.mxu1 %v167_v19  ;;  %639 = vmatprep.subr.mxu0 %v102_v20  ;;  %v82_v62 = vld [vmem:[#allocation2 + $0x108] sm:$0xff]  ;;  %v145_v2 = vld [vmem:[#allocation2 + $0x300] sm:$0xff]  ;;  %v582_v3 = vcombine.high %v42_v61, %v42_v61  ;;  %v272_v5 = vld [vmem:[#allocation2 + $0x6f8] sm:$0xff] }
  0x48   :  { %710 = vmatprep.subr.mxu1 %v166_v21  ;;  %640 = vmatpush2.msra.mxu0 %v101_v22  ;;  %v146_v63 = vld [vmem:[#allocation2 + $0x308] sm:$0xff]  ;;  %v207_v6 = vld [vmem:[#allocation2 + $0x4f0] sm:$0xff]  ;;  %v205_v10 = vld [vmem:[#allocation2 + $0x4e0] sm:$0xff] }
  0x49   :  { %711 = vmatpush2.msra.mxu1 %v165_v23  ;;  %641 = vmatprep.subr.mxu0 %v100_v24  ;;  %v271_v7 = vld [vmem:[#allocation2 + $0x6f0] sm:$0xff]  ;;  %v206_v8 = vld [vmem:[#allocation2 + $0x4e8] sm:$0xff]  ;;  %v269_v11 = vld [vmem:[#allocation2 + $0x6e0] sm:$0xff] }
  0x4a   :  { %712 = vmatprep.subr.mxu1 %v164_v25  ;;  %642 = vmatpush2.msra.mxu0 %v99_v26  ;;  %v270_v9 = vld [vmem:[#allocation2 + $0x6e8] sm:$0xff]  ;;  %v204_v12 = vld [vmem:[#allocation2 + $0x4d8] sm:$0xff]  ;;  %v203_v14 = vld [vmem:[#allocation2 + $0x4d0] sm:$0xff] }
  0x4b   :  { %713 = vmatpush2.msra.mxu1 %v163_v27  ;;  %643 = vmatprep.subr.mxu0 %v98_v28  ;;  %v268_v13 = vld [vmem:[#allocation2 + $0x6d8] sm:$0xff]  ;;  %v267_v15 = vld [vmem:[#allocation2 + $0x6d0] sm:$0xff]  ;;  %v202_v16 = vld [vmem:[#allocation2 + $0x4c8] sm:$0xff] }
  0x4c   :  { %714 = vmatprep.subr.mxu1 %v162_v29  ;;  %644 = vmatpush2.msra.mxu0 %v97_v30  ;;  %v266_v17 = vld [vmem:[#allocation2 + $0x6c8] sm:$0xff]  ;;  %v201_v18 = vld [vmem:[#allocation2 + $0x4c0] sm:$0xff]  ;;  %v200_v20 = vld [vmem:[#allocation2 + $0x4b8] sm:$0xff] }
  0x4d   :  { %715 = vmatpush2.msra.mxu1 %v161_v31  ;;  %645 = vmatprep.subr.mxu0 %v96_v32  ;;  %v265_v19 = vld [vmem:[#allocation2 + $0x6c0] sm:$0xff]  ;;  %v264_v21 = vld [vmem:[#allocation2 + $0x6b8] sm:$0xff]  ;;  %v199_v22 = vld [vmem:[#allocation2 + $0x4b0] sm:$0xff] }
  0x4e   :  { %716 = vmatprep.subr.mxu1 %v160_v33  ;;  %646 = vmatpush2.msra.mxu0 %v95_v34  ;;  %v263_v23 = vld [vmem:[#allocation2 + $0x6b0] sm:$0xff]  ;;  %v198_v24 = vld [vmem:[#allocation2 + $0x4a8] sm:$0xff]  ;;  %v197_v26 = vld [vmem:[#allocation2 + $0x4a0] sm:$0xff] }
  0x4f   :  { %717 = vmatpush2.msra.mxu1 %v159_v35  ;;  %647 = vmatprep.subr.mxu0 %v94_v36  ;;  %v262_v25 = vld [vmem:[#allocation2 + $0x6a8] sm:$0xff]  ;;  %v261_v27 = vld [vmem:[#allocation2 + $0x6a0] sm:$0xff]  ;;  %v196_v28 = vld [vmem:[#allocation2 + $0x498] sm:$0xff] }
  0x50   :  { %718 = vmatprep.subr.mxu1 %v158_v37  ;;  %648 = vmatpush2.msra.mxu0 %v93_v38  ;;  %v260_v29 = vld [vmem:[#allocation2 + $0x698] sm:$0xff]  ;;  %v195_v30 = vld [vmem:[#allocation2 + $0x490] sm:$0xff]  ;;  %v194_v32 = vld [vmem:[#allocation2 + $0x488] sm:$0xff] }
  0x51   :  { %719 = vmatpush2.msra.mxu1 %v157_v39  ;;  %649 = vmatprep.subr.mxu0 %v92_v40  ;;  %v259_v31 = vld [vmem:[#allocation2 + $0x690] sm:$0xff]  ;;  %v258_v33 = vld [vmem:[#allocation2 + $0x688] sm:$0xff]  ;;  %v193_v34 = vld [vmem:[#allocation2 + $0x480] sm:$0xff] }
  0x52   :  { %720 = vmatprep.subr.mxu1 %v156_v41  ;;  %650 = vmatpush2.msra.mxu0 %v91_v42  ;;  %v257_v35 = vld [vmem:[#allocation2 + $0x680] sm:$0xff]  ;;  %v192_v36 = vld [vmem:[#allocation2 + $0x478] sm:$0xff]  ;;  %v191_v38 = vld [vmem:[#allocation2 + $0x470] sm:$0xff] }
  0x53   :  { %721 = vmatpush2.msra.mxu1 %v155_v43  ;;  %651 = vmatprep.subr.mxu0 %v90_v44  ;;  %v256_v37 = vld [vmem:[#allocation2 + $0x678] sm:$0xff]  ;;  %v255_v39 = vld [vmem:[#allocation2 + $0x670] sm:$0xff]  ;;  %v190_v40 = vld [vmem:[#allocation2 + $0x468] sm:$0xff] }
  0x54   :  { %722 = vmatprep.subr.mxu1 %v154_v45  ;;  %652 = vmatpush2.msra.mxu0 %v89_v46  ;;  %v254_v41 = vld [vmem:[#allocation2 + $0x668] sm:$0xff]  ;;  %v189_v42 = vld [vmem:[#allocation2 + $0x460] sm:$0xff]  ;;  %v188_v44 = vld [vmem:[#allocation2 + $0x458] sm:$0xff] }
  0x55   :  { %723 = vmatpush2.msra.mxu1 %v153_v47  ;;  %653 = vmatprep.subr.mxu0 %v88_v48  ;;  %v253_v43 = vld [vmem:[#allocation2 + $0x660] sm:$0xff]  ;;  %v252_v45 = vld [vmem:[#allocation2 + $0x658] sm:$0xff]  ;;  %v187_v46 = vld [vmem:[#allocation2 + $0x450] sm:$0xff] }
  0x56   :  { %724 = vmatprep.subr.mxu1 %v152_v49  ;;  %654 = vmatpush2.msra.mxu0 %v87_v50  ;;  %v251_v47 = vld [vmem:[#allocation2 + $0x650] sm:$0xff]  ;;  %v186_v48 = vld [vmem:[#allocation2 + $0x448] sm:$0xff]  ;;  %v185_v50 = vld [vmem:[#allocation2 + $0x440] sm:$0xff] }
  0x57   :  { %725 = vmatpush2.msra.mxu1 %v151_v51  ;;  %655 = vmatprep.subr.mxu0 %v86_v52  ;;  %v250_v49 = vld [vmem:[#allocation2 + $0x648] sm:$0xff]  ;;  %v249_v51 = vld [vmem:[#allocation2 + $0x640] sm:$0xff]  ;;  %v184_v52 = vld [vmem:[#allocation2 + $0x438] sm:$0xff] }
  0x58   :  { %726 = vmatprep.subr.mxu1 %v150_v53  ;;  %656 = vmatpush2.msra.mxu0 %v85_v54  ;;  %v248_v53 = vld [vmem:[#allocation2 + $0x638] sm:$0xff]  ;;  %v183_v54 = vld [vmem:[#allocation2 + $0x430] sm:$0xff] }
  0x59   :  { %727 = vmatpush2.msra.mxu1 %v149_v55  ;;  %657 = vmatprep.subr.mxu0 %v84_v57  ;;  %v247_v55 = vld [vmem:[#allocation2 + $0x630] sm:$0xff]  ;;  %v246_v57 = vld [vmem:[#allocation2 + $0x628] sm:$0xff] }
  0x5a   :  { %728 = vmatprep.subr.mxu1 %v148_v58  ;;  %658 = vmatpush2.msra.mxu0 %v83_v59  ;;  %v181_v58 = vld [vmem:[#allocation2 + $0x420] sm:$0xff] }
  0x5b   :  { %729 = vmatpush2.msra.mxu1 %v147_v60  ;;  %659 = vmatprep.subr.mxu0 %v82_v62  ;;  %v245_v59 = vld [vmem:[#allocation2 + $0x620] sm:$0xff]  ;;  %v180_v60 = vld [vmem:[#allocation2 + $0x418] sm:$0xff]  ;;  %v179_v62 = vld [vmem:[#allocation2 + $0x410] sm:$0xff] }
  0x5c   :  { %730 = vmatprep.subr.mxu1 %v146_v63  ;;  %660 = vmatpush2.msra.mxu0 %v81_v1  ;;  %v243_v63 = vld [vmem:[#allocation2 + $0x610] sm:$0xff]  ;;  %v242_v1 = vld [vmem:[#allocation2 + $0x608] sm:$0xff] }
  0x5d   :  { %661 = vmatprep.mubr.f32.mxu0 %v581_v0  ;;  %731 = vmatpush2.msra.mxu1 %v145_v2  ;;  %v178_v0 = vld [vmem:[#allocation2 + $0x408] sm:$0xff]  ;;  %v177_v2 = vld [vmem:[#allocation2 + $0x400] sm:$0xff] }
  0x5e   :  { %662 = vmatmul.mubr.f32.vlgmr.msra.gmra.mxu0 %v41_v56  ;;  %732 = vmatprep.mubr.f32.mxu1 %v582_v3  ;;  %v182_v56 = vld [vmem:[#allocation2 + $0x428] sm:$0xff]  ;;  %v241_v3 = vld [vmem:[#allocation2 + $0x600] sm:$0xff] }
  0x5f   :  { %739 = vmatprep.subr.mxu0 %v208_v4  ;;  %810 = vmatprep.subr.mxu1 %v272_v5  ;;  %v240_v4 = vld [vmem:[#allocation2 + $0x5f8] sm:$0xff] }
  0x60   :  { %733 = vmatmul.mubr.f32.vlgmr.msra.gmra.mxu1 %v42_v61  ;;  %740 = vmatpush1.msra.mxu0 %v207_v6  ;;  %v244_v61 = vld [vmem:[#allocation2 + $0x618] sm:$0xff]  ;;  %v239_v6 = vld [vmem:[#allocation2 + $0x5f0] sm:$0xff] }
  0x61   :  { %811 = vmatpush1.msra.mxu1 %v271_v7  ;;  %741 = vmatprep.subr.mxu0 %v206_v8  ;;  %v304_v5 = vld [vmem:[#allocation2 + $0x7f8] sm:$0xff]  ;;  %v303_v7 = vld [vmem:[#allocation2 + $0x7f0] sm:$0xff]  ;;  %v238_v8 = vld [vmem:[#allocation2 + $0x5e8] sm:$0xff] }
  0x62   :  { %812 = vmatprep.subr.mxu1 %v270_v9  ;;  %742 = vmatpush1.msra.mxu0 %v205_v10  ;;  %v302_v9 = vld [vmem:[#allocation2 + $0x7e8] sm:$0xff]  ;;  %v237_v10 = vld [vmem:[#allocation2 + $0x5e0] sm:$0xff] }
  0x63   :  { %813 = vmatpush1.msra.mxu1 %v269_v11  ;;  %743 = vmatprep.subr.mxu0 %v204_v12  ;;  %v301_v11 = vld [vmem:[#allocation2 + $0x7e0] sm:$0xff]  ;;  %v236_v12 = vld [vmem:[#allocation2 + $0x5d8] sm:$0xff] }
  0x64   :  { %814 = vmatprep.subr.mxu1 %v268_v13  ;;  %744 = vmatpush1.msra.mxu0 %v203_v14  ;;  %v300_v13 = vld [vmem:[#allocation2 + $0x7d8] sm:$0xff]  ;;  %v235_v14 = vld [vmem:[#allocation2 + $0x5d0] sm:$0xff] }
  0x65   :  { %815 = vmatpush1.msra.mxu1 %v267_v15  ;;  %745 = vmatprep.subr.mxu0 %v202_v16  ;;  %v299_v15 = vld [vmem:[#allocation2 + $0x7d0] sm:$0xff]  ;;  %v234_v16 = vld [vmem:[#allocation2 + $0x5c8] sm:$0xff] }
  0x66   :  { %816 = vmatprep.subr.mxu1 %v266_v17  ;;  %746 = vmatpush1.msra.mxu0 %v201_v18  ;;  %v298_v17 = vld [vmem:[#allocation2 + $0x7c8] sm:$0xff]  ;;  %v233_v18 = vld [vmem:[#allocation2 + $0x5c0] sm:$0xff] }
  0x67   :  { %817 = vmatpush1.msra.mxu1 %v265_v19  ;;  %747 = vmatprep.subr.mxu0 %v200_v20  ;;  %v297_v19 = vld [vmem:[#allocation2 + $0x7c0] sm:$0xff]  ;;  %v232_v20 = vld [vmem:[#allocation2 + $0x5b8] sm:$0xff] }
  0x68   :  { %818 = vmatprep.subr.mxu1 %v264_v21  ;;  %748 = vmatpush1.msra.mxu0 %v199_v22  ;;  %v296_v21 = vld [vmem:[#allocation2 + $0x7b8] sm:$0xff]  ;;  %v231_v22 = vld [vmem:[#allocation2 + $0x5b0] sm:$0xff] }
  0x69   :  { %819 = vmatpush1.msra.mxu1 %v263_v23  ;;  %749 = vmatprep.subr.mxu0 %v198_v24  ;;  %v295_v23 = vld [vmem:[#allocation2 + $0x7b0] sm:$0xff]  ;;  %v230_v24 = vld [vmem:[#allocation2 + $0x5a8] sm:$0xff] }
  0x6a   :  { %820 = vmatprep.subr.mxu1 %v262_v25  ;;  %750 = vmatpush1.msra.mxu0 %v197_v26  ;;  %v294_v25 = vld [vmem:[#allocation2 + $0x7a8] sm:$0xff]  ;;  %v229_v26 = vld [vmem:[#allocation2 + $0x5a0] sm:$0xff] }
  0x6b   :  { %821 = vmatpush1.msra.mxu1 %v261_v27  ;;  %751 = vmatprep.subr.mxu0 %v196_v28  ;;  %v293_v27 = vld [vmem:[#allocation2 + $0x7a0] sm:$0xff]  ;;  %v228_v28 = vld [vmem:[#allocation2 + $0x598] sm:$0xff] }
  0x6c   :  { %822 = vmatprep.subr.mxu1 %v260_v29  ;;  %752 = vmatpush1.msra.mxu0 %v195_v30  ;;  %v292_v29 = vld [vmem:[#allocation2 + $0x798] sm:$0xff]  ;;  %v227_v30 = vld [vmem:[#allocation2 + $0x590] sm:$0xff] }
  0x6d   :  { %823 = vmatpush1.msra.mxu1 %v259_v31  ;;  %753 = vmatprep.subr.mxu0 %v194_v32  ;;  %v291_v31 = vld [vmem:[#allocation2 + $0x790] sm:$0xff]  ;;  %v226_v32 = vld [vmem:[#allocation2 + $0x588] sm:$0xff] }
  0x6e   :  { %824 = vmatprep.subr.mxu1 %v258_v33  ;;  %754 = vmatpush1.msra.mxu0 %v193_v34  ;;  %v290_v33 = vld [vmem:[#allocation2 + $0x788] sm:$0xff]  ;;  %v225_v34 = vld [vmem:[#allocation2 + $0x580] sm:$0xff] }
  0x6f   :  { %825 = vmatpush1.msra.mxu1 %v257_v35  ;;  %755 = vmatprep.subr.mxu0 %v192_v36  ;;  %v289_v35 = vld [vmem:[#allocation2 + $0x780] sm:$0xff]  ;;  %v224_v36 = vld [vmem:[#allocation2 + $0x578] sm:$0xff] }
  0x70   :  { %826 = vmatprep.subr.mxu1 %v256_v37  ;;  %756 = vmatpush1.msra.mxu0 %v191_v38  ;;  %v288_v37 = vld [vmem:[#allocation2 + $0x778] sm:$0xff]  ;;  %v223_v38 = vld [vmem:[#allocation2 + $0x570] sm:$0xff] }
  0x71   :  { %827 = vmatpush1.msra.mxu1 %v255_v39  ;;  %757 = vmatprep.subr.mxu0 %v190_v40  ;;  %v287_v39 = vld [vmem:[#allocation2 + $0x770] sm:$0xff]  ;;  %v222_v40 = vld [vmem:[#allocation2 + $0x568] sm:$0xff] }
  0x72   :  { %828 = vmatprep.subr.mxu1 %v254_v41  ;;  %758 = vmatpush1.msra.mxu0 %v189_v42  ;;  %v286_v41 = vld [vmem:[#allocation2 + $0x768] sm:$0xff]  ;;  %v221_v42 = vld [vmem:[#allocation2 + $0x560] sm:$0xff] }
  0x73   :  { %829 = vmatpush1.msra.mxu1 %v253_v43  ;;  %759 = vmatprep.subr.mxu0 %v188_v44  ;;  %v285_v43 = vld [vmem:[#allocation2 + $0x760] sm:$0xff]  ;;  %v220_v44 = vld [vmem:[#allocation2 + $0x558] sm:$0xff] }
  0x74   :  { %830 = vmatprep.subr.mxu1 %v252_v45  ;;  %760 = vmatpush1.msra.mxu0 %v187_v46  ;;  %v284_v45 = vld [vmem:[#allocation2 + $0x758] sm:$0xff]  ;;  %v219_v46 = vld [vmem:[#allocation2 + $0x550] sm:$0xff] }
  0x75   :  { %831 = vmatpush1.msra.mxu1 %v251_v47  ;;  %761 = vmatprep.subr.mxu0 %v186_v48  ;;  %v283_v47 = vld [vmem:[#allocation2 + $0x750] sm:$0xff]  ;;  %v218_v48 = vld [vmem:[#allocation2 + $0x548] sm:$0xff] }
  0x76   :  { %832 = vmatprep.subr.mxu1 %v250_v49  ;;  %762 = vmatpush1.msra.mxu0 %v185_v50  ;;  %v282_v49 = vld [vmem:[#allocation2 + $0x748] sm:$0xff]  ;;  %v217_v50 = vld [vmem:[#allocation2 + $0x540] sm:$0xff] }
  0x77   :  { %833 = vmatpush1.msra.mxu1 %v249_v51  ;;  %763 = vmatprep.subr.mxu0 %v184_v52  ;;  %v281_v51 = vld [vmem:[#allocation2 + $0x740] sm:$0xff]  ;;  %v216_v52 = vld [vmem:[#allocation2 + $0x538] sm:$0xff] }
  0x78   :  { %834 = vmatprep.subr.mxu1 %v248_v53  ;;  %764 = vmatpush1.msra.mxu0 %v183_v54  ;;  %v280_v53 = vld [vmem:[#allocation2 + $0x738] sm:$0xff]  ;;  %v215_v54 = vld [vmem:[#allocation2 + $0x530] sm:$0xff] }
  0x79   :  { %835 = vmatpush1.msra.mxu1 %v247_v55  ;;  %765 = vmatprep.subr.mxu0 %v182_v56  ;;  %v279_v55 = vld [vmem:[#allocation2 + $0x730] sm:$0xff]  ;;  %v214_v56 = vld [vmem:[#allocation2 + $0x528] sm:$0xff] }
  0x7a   :  { %836 = vmatprep.subr.mxu1 %v246_v57  ;;  %766 = vmatpush1.msra.mxu0 %v181_v58  ;;  %v278_v57 = vld [vmem:[#allocation2 + $0x728] sm:$0xff]  ;;  %v213_v58 = vld [vmem:[#allocation2 + $0x520] sm:$0xff] }
  0x7b   :  { %837 = vmatpush1.msra.mxu1 %v245_v59  ;;  %767 = vmatprep.subr.mxu0 %v180_v60  ;;  %v277_v59 = vld [vmem:[#allocation2 + $0x720] sm:$0xff]  ;;  %v43_v60 = vld [vmem:[%s1323_s0 + $0x10] sm:$0xff] }
  0x7c   :  { %838 = vmatprep.subr.mxu1 %v244_v61  ;;  %768 = vmatpush1.msra.mxu0 %v179_v62  ;;  %v212_v61 = vld [vmem:[#allocation2 + $0x518] sm:$0xff] }
  0x7d   :  { %839 = vmatpush1.msra.mxu1 %v243_v63  ;;  %769 = vmatprep.subr.mxu0 %v178_v0  ;;  %v276_v62 = vld [vmem:[#allocation2 + $0x718] sm:$0xff]  ;;  %v211_v63 = vld [vmem:[#allocation2 + $0x510] sm:$0xff] }
  0x7e   :  { %840 = vmatprep.subr.mxu1 %v242_v1  ;;  %770 = vmatpush1.msra.mxu0 %v177_v2  ;;  %v275_v0 = vld [vmem:[#allocation2 + $0x710] sm:$0xff]  ;;  %v44_v1 = vld [vmem:[%s1323_s0 + $0x18] sm:$0xff]  ;;  %v210_v2 = vld [vmem:[#allocation2 + $0x508] sm:$0xff] }
  0x7f   :  { %841 = vmatpush1.msra.mxu1 %v241_v3  ;;  %771 = vmatprep.subr.mxu0 %v240_v4  ;;  %v274_v3 = vld [vmem:[#allocation2 + $0x708] sm:$0xff]  ;;  %v583_v4 = vcombine.high %v43_v60, %v43_v60 }
  0x80   :  { %842 = vmatprep.subr.mxu1 %v304_v5  ;;  %772 = vmatpush2.msra.mxu0 %v239_v6  ;;  %v209_v5 = vld [vmem:[#allocation2 + $0x500] sm:$0xff] }
  0x81   :  { %843 = vmatpush2.msra.mxu1 %v303_v7  ;;  %773 = vmatprep.subr.mxu0 %v238_v8  ;;  %v273_v6 = vld [vmem:[#allocation2 + $0x700] sm:$0xff]  ;;  %v584_v7 = vcombine.high %v44_v1, %v44_v1  ;;  %v336_v8 = vld [vmem:[#allocation2 + $0x8f8] sm:$0xff] }
  0x82   :  { %844 = vmatprep.subr.mxu1 %v302_v9  ;;  %774 = vmatpush2.msra.mxu0 %v237_v10  ;;  %v400_v9 = vld [vmem:[#allocation2 + $0xaf8] sm:$0xff]  ;;  %v335_v10 = vld [vmem:[#allocation2 + $0x8f0] sm:$0xff] }
  0x83   :  { %845 = vmatpush2.msra.mxu1 %v301_v11  ;;  %775 = vmatprep.subr.mxu0 %v236_v12  ;;  %v399_v11 = vld [vmem:[#allocation2 + $0xaf0] sm:$0xff]  ;;  %v334_v12 = vld [vmem:[#allocation2 + $0x8e8] sm:$0xff] }
  0x84   :  { %846 = vmatprep.subr.mxu1 %v300_v13  ;;  %776 = vmatpush2.msra.mxu0 %v235_v14  ;;  %v398_v13 = vld [vmem:[#allocation2 + $0xae8] sm:$0xff]  ;;  %v333_v14 = vld [vmem:[#allocation2 + $0x8e0] sm:$0xff] }
  0x85   :  { %847 = vmatpush2.msra.mxu1 %v299_v15  ;;  %777 = vmatprep.subr.mxu0 %v234_v16  ;;  %v397_v15 = vld [vmem:[#allocation2 + $0xae0] sm:$0xff]  ;;  %v332_v16 = vld [vmem:[#allocation2 + $0x8d8] sm:$0xff] }
  0x86   :  { %848 = vmatprep.subr.mxu1 %v298_v17  ;;  %778 = vmatpush2.msra.mxu0 %v233_v18  ;;  %v396_v17 = vld [vmem:[#allocation2 + $0xad8] sm:$0xff]  ;;  %v331_v18 = vld [vmem:[#allocation2 + $0x8d0] sm:$0xff] }
  0x87   :  { %849 = vmatpush2.msra.mxu1 %v297_v19  ;;  %779 = vmatprep.subr.mxu0 %v232_v20  ;;  %v395_v19 = vld [vmem:[#allocation2 + $0xad0] sm:$0xff]  ;;  %v330_v20 = vld [vmem:[#allocation2 + $0x8c8] sm:$0xff] }
  0x88   :  { %850 = vmatprep.subr.mxu1 %v296_v21  ;;  %780 = vmatpush2.msra.mxu0 %v231_v22  ;;  %v394_v21 = vld [vmem:[#allocation2 + $0xac8] sm:$0xff]  ;;  %v329_v22 = vld [vmem:[#allocation2 + $0x8c0] sm:$0xff] }
  0x89   :  { %851 = vmatpush2.msra.mxu1 %v295_v23  ;;  %781 = vmatprep.subr.mxu0 %v230_v24  ;;  %v393_v23 = vld [vmem:[#allocation2 + $0xac0] sm:$0xff]  ;;  %v328_v24 = vld [vmem:[#allocation2 + $0x8b8] sm:$0xff] }
  0x8a   :  { %852 = vmatprep.subr.mxu1 %v294_v25  ;;  %782 = vmatpush2.msra.mxu0 %v229_v26  ;;  %v392_v25 = vld [vmem:[#allocation2 + $0xab8] sm:$0xff]  ;;  %v327_v26 = vld [vmem:[#allocation2 + $0x8b0] sm:$0xff] }
  0x8b   :  { %853 = vmatpush2.msra.mxu1 %v293_v27  ;;  %783 = vmatprep.subr.mxu0 %v228_v28  ;;  %v391_v27 = vld [vmem:[#allocation2 + $0xab0] sm:$0xff]  ;;  %v326_v28 = vld [vmem:[#allocation2 + $0x8a8] sm:$0xff] }
  0x8c   :  { %854 = vmatprep.subr.mxu1 %v292_v29  ;;  %784 = vmatpush2.msra.mxu0 %v227_v30  ;;  %v390_v29 = vld [vmem:[#allocation2 + $0xaa8] sm:$0xff]  ;;  %v325_v30 = vld [vmem:[#allocation2 + $0x8a0] sm:$0xff] }
  0x8d   :  { %855 = vmatpush2.msra.mxu1 %v291_v31  ;;  %785 = vmatprep.subr.mxu0 %v226_v32  ;;  %v389_v31 = vld [vmem:[#allocation2 + $0xaa0] sm:$0xff]  ;;  %v324_v32 = vld [vmem:[#allocation2 + $0x898] sm:$0xff] }
  0x8e   :  { %856 = vmatprep.subr.mxu1 %v290_v33  ;;  %786 = vmatpush2.msra.mxu0 %v225_v34  ;;  %v388_v33 = vld [vmem:[#allocation2 + $0xa98] sm:$0xff]  ;;  %v323_v34 = vld [vmem:[#allocation2 + $0x890] sm:$0xff] }
  0x8f   :  { %857 = vmatpush2.msra.mxu1 %v289_v35  ;;  %787 = vmatprep.subr.mxu0 %v224_v36  ;;  %v387_v35 = vld [vmem:[#allocation2 + $0xa90] sm:$0xff]  ;;  %v322_v36 = vld [vmem:[#allocation2 + $0x888] sm:$0xff] }
  0x90   :  { %858 = vmatprep.subr.mxu1 %v288_v37  ;;  %788 = vmatpush2.msra.mxu0 %v223_v38  ;;  %v386_v37 = vld [vmem:[#allocation2 + $0xa88] sm:$0xff]  ;;  %v321_v38 = vld [vmem:[#allocation2 + $0x880] sm:$0xff] }
  0x91   :  { %859 = vmatpush2.msra.mxu1 %v287_v39  ;;  %789 = vmatprep.subr.mxu0 %v222_v40  ;;  %v385_v39 = vld [vmem:[#allocation2 + $0xa80] sm:$0xff]  ;;  %v320_v40 = vld [vmem:[#allocation2 + $0x878] sm:$0xff] }
  0x92   :  { %860 = vmatprep.subr.mxu1 %v286_v41  ;;  %790 = vmatpush2.msra.mxu0 %v221_v42  ;;  %v384_v41 = vld [vmem:[#allocation2 + $0xa78] sm:$0xff]  ;;  %v319_v42 = vld [vmem:[#allocation2 + $0x870] sm:$0xff] }
  0x93   :  { %861 = vmatpush2.msra.mxu1 %v285_v43  ;;  %791 = vmatprep.subr.mxu0 %v220_v44  ;;  %v383_v43 = vld [vmem:[#allocation2 + $0xa70] sm:$0xff]  ;;  %v318_v44 = vld [vmem:[#allocation2 + $0x868] sm:$0xff] }
  0x94   :  { %862 = vmatprep.subr.mxu1 %v284_v45  ;;  %792 = vmatpush2.msra.mxu0 %v219_v46  ;;  %v382_v45 = vld [vmem:[#allocation2 + $0xa68] sm:$0xff]  ;;  %v317_v46 = vld [vmem:[#allocation2 + $0x860] sm:$0xff] }
  0x95   :  { %863 = vmatpush2.msra.mxu1 %v283_v47  ;;  %793 = vmatprep.subr.mxu0 %v218_v48  ;;  %v381_v47 = vld [vmem:[#allocation2 + $0xa60] sm:$0xff]  ;;  %v316_v48 = vld [vmem:[#allocation2 + $0x858] sm:$0xff] }
  0x96   :  { %864 = vmatprep.subr.mxu1 %v282_v49  ;;  %794 = vmatpush2.msra.mxu0 %v217_v50  ;;  %v380_v49 = vld [vmem:[#allocation2 + $0xa58] sm:$0xff]  ;;  %v315_v50 = vld [vmem:[#allocation2 + $0x850] sm:$0xff] }
  0x97   :  { %865 = vmatpush2.msra.mxu1 %v281_v51  ;;  %795 = vmatprep.subr.mxu0 %v216_v52  ;;  %v379_v51 = vld [vmem:[#allocation2 + $0xa50] sm:$0xff]  ;;  %v314_v52 = vld [vmem:[#allocation2 + $0x848] sm:$0xff] }
  0x98   :  { %866 = vmatprep.subr.mxu1 %v280_v53  ;;  %796 = vmatpush2.msra.mxu0 %v215_v54  ;;  %v378_v53 = vld [vmem:[#allocation2 + $0xa48] sm:$0xff]  ;;  %v313_v54 = vld [vmem:[#allocation2 + $0x840] sm:$0xff] }
  0x99   :  { %867 = vmatpush2.msra.mxu1 %v279_v55  ;;  %797 = vmatprep.subr.mxu0 %v214_v56  ;;  %v377_v55 = vld [vmem:[#allocation2 + $0xa40] sm:$0xff]  ;;  %v312_v56 = vld [vmem:[#allocation2 + $0x838] sm:$0xff] }
  0x9a   :  { %868 = vmatprep.subr.mxu1 %v278_v57  ;;  %798 = vmatpush2.msra.mxu0 %v213_v58  ;;  %v376_v57 = vld [vmem:[#allocation2 + $0xa38] sm:$0xff]  ;;  %v311_v58 = vld [vmem:[#allocation2 + $0x830] sm:$0xff] }
  0x9b   :  { %869 = vmatpush2.msra.mxu1 %v277_v59  ;;  %799 = vmatprep.subr.mxu0 %v212_v61  ;;  %v375_v59 = vld [vmem:[#allocation2 + $0xa30] sm:$0xff]  ;;  %v374_v61 = vld [vmem:[#allocation2 + $0xa28] sm:$0xff] }
  0x9c   :  { %870 = vmatprep.subr.mxu1 %v276_v62  ;;  %800 = vmatpush2.msra.mxu0 %v211_v63  ;;  %v309_v62 = vld [vmem:[#allocation2 + $0x820] sm:$0xff] }
  0x9d   :  { %871 = vmatpush2.msra.mxu1 %v275_v0  ;;  %801 = vmatprep.subr.mxu0 %v210_v2  ;;  %v373_v63 = vld [vmem:[#allocation2 + $0xa20] sm:$0xff]  ;;  %v308_v0 = vld [vmem:[#allocation2 + $0x818] sm:$0xff]  ;;  %v307_v2 = vld [vmem:[#allocation2 + $0x810] sm:$0xff] }
  0x9e   :  { %872 = vmatprep.subr.mxu1 %v274_v3  ;;  %802 = vmatpush2.msra.mxu0 %v209_v5  ;;  %v371_v3 = vld [vmem:[#allocation2 + $0xa10] sm:$0xff]  ;;  %v370_v5 = vld [vmem:[#allocation2 + $0xa08] sm:$0xff] }
  0x9f   :  { %803 = vmatprep.mubr.f32.mxu0 %v583_v4  ;;  %873 = vmatpush2.msra.mxu1 %v273_v6  ;;  %v306_v4 = vld [vmem:[#allocation2 + $0x808] sm:$0xff]  ;;  %v305_v6 = vld [vmem:[#allocation2 + $0x800] sm:$0xff] }
  0xa0   :  { %804 = vmatmul.mubr.f32.vlgmr.msra.gmra.mxu0 %v43_v60  ;;  %874 = vmatprep.mubr.f32.mxu1 %v584_v7  ;;  %v310_v60 = vld [vmem:[#allocation2 + $0x828] sm:$0xff]  ;;  %v369_v7 = vld [vmem:[#allocation2 + $0xa00] sm:$0xff] }
  0xa1   :  { %881 = vmatprep.subr.mxu0 %v336_v8  ;;  %952 = vmatprep.subr.mxu1 %v400_v9  ;;  %v368_v8 = vld [vmem:[#allocation2 + $0x9f8] sm:$0xff] }
  0xa2   :  { %875 = vmatmul.mubr.f32.vlgmr.msra.gmra.mxu1 %v44_v1  ;;  %882 = vmatpush1.msra.mxu0 %v335_v10  ;;  %v372_v1 = vld [vmem:[#allocation2 + $0xa18] sm:$0xff]  ;;  %v367_v10 = vld [vmem:[#allocation2 + $0x9f0] sm:$0xff] }
  0xa3   :  { %953 = vmatpush1.msra.mxu1 %v399_v11  ;;  %883 = vmatprep.subr.mxu0 %v334_v12  ;;  %v432_v9 = vld [vmem:[#allocation2 + $0xbf8] sm:$0xff]  ;;  %v431_v11 = vld [vmem:[#allocation2 + $0xbf0] sm:$0xff]  ;;  %v366_v12 = vld [vmem:[#allocation2 + $0x9e8] sm:$0xff] }
  0xa4   :  { %954 = vmatprep.subr.mxu1 %v398_v13  ;;  %884 = vmatpush1.msra.mxu0 %v333_v14  ;;  %v430_v13 = vld [vmem:[#allocation2 + $0xbe8] sm:$0xff]  ;;  %v365_v14 = vld [vmem:[#allocation2 + $0x9e0] sm:$0xff] }
  0xa5   :  { %955 = vmatpush1.msra.mxu1 %v397_v15  ;;  %885 = vmatprep.subr.mxu0 %v332_v16  ;;  %v429_v15 = vld [vmem:[#allocation2 + $0xbe0] sm:$0xff]  ;;  %v364_v16 = vld [vmem:[#allocation2 + $0x9d8] sm:$0xff] }
  0xa6   :  { %956 = vmatprep.subr.mxu1 %v396_v17  ;;  %886 = vmatpush1.msra.mxu0 %v331_v18  ;;  %v428_v17 = vld [vmem:[#allocation2 + $0xbd8] sm:$0xff]  ;;  %v363_v18 = vld [vmem:[#allocation2 + $0x9d0] sm:$0xff] }
  0xa7   :  { %957 = vmatpush1.msra.mxu1 %v395_v19  ;;  %887 = vmatprep.subr.mxu0 %v330_v20  ;;  %v427_v19 = vld [vmem:[#allocation2 + $0xbd0] sm:$0xff]  ;;  %v362_v20 = vld [vmem:[#allocation2 + $0x9c8] sm:$0xff] }
  0xa8   :  { %958 = vmatprep.subr.mxu1 %v394_v21  ;;  %888 = vmatpush1.msra.mxu0 %v329_v22  ;;  %v426_v21 = vld [vmem:[#allocation2 + $0xbc8] sm:$0xff]  ;;  %v361_v22 = vld [vmem:[#allocation2 + $0x9c0] sm:$0xff] }
  0xa9   :  { %959 = vmatpush1.msra.mxu1 %v393_v23  ;;  %889 = vmatprep.subr.mxu0 %v328_v24  ;;  %v425_v23 = vld [vmem:[#allocation2 + $0xbc0] sm:$0xff]  ;;  %v360_v24 = vld [vmem:[#allocation2 + $0x9b8] sm:$0xff] }
  0xaa   :  { %960 = vmatprep.subr.mxu1 %v392_v25  ;;  %890 = vmatpush1.msra.mxu0 %v327_v26  ;;  %v424_v25 = vld [vmem:[#allocation2 + $0xbb8] sm:$0xff]  ;;  %v359_v26 = vld [vmem:[#allocation2 + $0x9b0] sm:$0xff] }
  0xab   :  { %961 = vmatpush1.msra.mxu1 %v391_v27  ;;  %891 = vmatprep.subr.mxu0 %v326_v28  ;;  %v423_v27 = vld [vmem:[#allocation2 + $0xbb0] sm:$0xff]  ;;  %v358_v28 = vld [vmem:[#allocation2 + $0x9a8] sm:$0xff] }
  0xac   :  { %962 = vmatprep.subr.mxu1 %v390_v29  ;;  %892 = vmatpush1.msra.mxu0 %v325_v30  ;;  %v422_v29 = vld [vmem:[#allocation2 + $0xba8] sm:$0xff]  ;;  %v357_v30 = vld [vmem:[#allocation2 + $0x9a0] sm:$0xff] }
  0xad   :  { %963 = vmatpush1.msra.mxu1 %v389_v31  ;;  %893 = vmatprep.subr.mxu0 %v324_v32  ;;  %v421_v31 = vld [vmem:[#allocation2 + $0xba0] sm:$0xff]  ;;  %v356_v32 = vld [vmem:[#allocation2 + $0x998] sm:$0xff] }
  0xae   :  { %964 = vmatprep.subr.mxu1 %v388_v33  ;;  %894 = vmatpush1.msra.mxu0 %v323_v34  ;;  %v420_v33 = vld [vmem:[#allocation2 + $0xb98] sm:$0xff]  ;;  %v355_v34 = vld [vmem:[#allocation2 + $0x990] sm:$0xff] }
  0xaf   :  { %965 = vmatpush1.msra.mxu1 %v387_v35  ;;  %895 = vmatprep.subr.mxu0 %v322_v36  ;;  %v419_v35 = vld [vmem:[#allocation2 + $0xb90] sm:$0xff]  ;;  %v354_v36 = vld [vmem:[#allocation2 + $0x988] sm:$0xff] }
  0xb0   :  { %966 = vmatprep.subr.mxu1 %v386_v37  ;;  %896 = vmatpush1.msra.mxu0 %v321_v38  ;;  %v418_v37 = vld [vmem:[#allocation2 + $0xb88] sm:$0xff]  ;;  %v353_v38 = vld [vmem:[#allocation2 + $0x980] sm:$0xff] }
  0xb1   :  { %967 = vmatpush1.msra.mxu1 %v385_v39  ;;  %897 = vmatprep.subr.mxu0 %v320_v40  ;;  %v417_v39 = vld [vmem:[#allocation2 + $0xb80] sm:$0xff]  ;;  %v352_v40 = vld [vmem:[#allocation2 + $0x978] sm:$0xff] }
  0xb2   :  { %968 = vmatprep.subr.mxu1 %v384_v41  ;;  %898 = vmatpush1.msra.mxu0 %v319_v42  ;;  %v416_v41 = vld [vmem:[#allocation2 + $0xb78] sm:$0xff]  ;;  %v351_v42 = vld [vmem:[#allocation2 + $0x970] sm:$0xff] }
  0xb3   :  { %969 = vmatpush1.msra.mxu1 %v383_v43  ;;  %899 = vmatprep.subr.mxu0 %v318_v44  ;;  %v415_v43 = vld [vmem:[#allocation2 + $0xb70] sm:$0xff]  ;;  %v350_v44 = vld [vmem:[#allocation2 + $0x968] sm:$0xff] }
  0xb4   :  { %970 = vmatprep.subr.mxu1 %v382_v45  ;;  %900 = vmatpush1.msra.mxu0 %v317_v46  ;;  %v414_v45 = vld [vmem:[#allocation2 + $0xb68] sm:$0xff]  ;;  %v349_v46 = vld [vmem:[#allocation2 + $0x960] sm:$0xff] }
  0xb5   :  { %971 = vmatpush1.msra.mxu1 %v381_v47  ;;  %901 = vmatprep.subr.mxu0 %v316_v48  ;;  %v413_v47 = vld [vmem:[#allocation2 + $0xb60] sm:$0xff]  ;;  %v348_v48 = vld [vmem:[#allocation2 + $0x958] sm:$0xff] }
  0xb6   :  { %972 = vmatprep.subr.mxu1 %v380_v49  ;;  %902 = vmatpush1.msra.mxu0 %v315_v50  ;;  %v412_v49 = vld [vmem:[#allocation2 + $0xb58] sm:$0xff]  ;;  %v347_v50 = vld [vmem:[#allocation2 + $0x950] sm:$0xff] }
  0xb7   :  { %973 = vmatpush1.msra.mxu1 %v379_v51  ;;  %903 = vmatprep.subr.mxu0 %v314_v52  ;;  %v411_v51 = vld [vmem:[#allocation2 + $0xb50] sm:$0xff]  ;;  %v346_v52 = vld [vmem:[#allocation2 + $0x948] sm:$0xff] }
  0xb8   :  { %974 = vmatprep.subr.mxu1 %v378_v53  ;;  %904 = vmatpush1.msra.mxu0 %v313_v54  ;;  %v410_v53 = vld [vmem:[#allocation2 + $0xb48] sm:$0xff]  ;;  %v345_v54 = vld [vmem:[#allocation2 + $0x940] sm:$0xff] }
  0xb9   :  { %975 = vmatpush1.msra.mxu1 %v377_v55  ;;  %905 = vmatprep.subr.mxu0 %v312_v56  ;;  %v409_v55 = vld [vmem:[#allocation2 + $0xb40] sm:$0xff]  ;;  %v344_v56 = vld [vmem:[#allocation2 + $0x938] sm:$0xff] }
  0xba   :  { %976 = vmatprep.subr.mxu1 %v376_v57  ;;  %906 = vmatpush1.msra.mxu0 %v311_v58  ;;  %v408_v57 = vld [vmem:[#allocation2 + $0xb38] sm:$0xff]  ;;  %v343_v58 = vld [vmem:[#allocation2 + $0x930] sm:$0xff] }
  0xbb   :  { %977 = vmatpush1.msra.mxu1 %v375_v59  ;;  %907 = vmatprep.subr.mxu0 %v310_v60  ;;  %v407_v59 = vld [vmem:[#allocation2 + $0xb30] sm:$0xff]  ;;  %v342_v60 = vld [vmem:[#allocation2 + $0x928] sm:$0xff] }
  0xbc   :  { %978 = vmatprep.subr.mxu1 %v374_v61  ;;  %908 = vmatpush1.msra.mxu0 %v309_v62  ;;  %v406_v61 = vld [vmem:[#allocation2 + $0xb28] sm:$0xff]  ;;  %v341_v62 = vld [vmem:[#allocation2 + $0x920] sm:$0xff] }
  0xbd   :  { %979 = vmatpush1.msra.mxu1 %v373_v63  ;;  %909 = vmatprep.subr.mxu0 %v308_v0  ;;  %v405_v63 = vld [vmem:[#allocation2 + $0xb20] sm:$0xff] }
  0xbe   :  { %980 = vmatprep.subr.mxu1 %v372_v1  ;;  %910 = vmatpush1.msra.mxu0 %v307_v2  ;;  %v45_v0 = vld [vmem:[%s1323_s0 + $0x20] sm:$0xff]  ;;  %v340_v1 = vld [vmem:[#allocation2 + $0x918] sm:$0xff] }
  0xbf   :  { %981 = vmatpush1.msra.mxu1 %v371_v3  ;;  %911 = vmatprep.subr.mxu0 %v306_v4  ;;  %v404_v2 = vld [vmem:[#allocation2 + $0xb18] sm:$0xff]  ;;  %v339_v3 = vld [vmem:[#allocation2 + $0x910] sm:$0xff] }
  0xc0   :  { %982 = vmatprep.subr.mxu1 %v370_v5  ;;  %912 = vmatpush1.msra.mxu0 %v305_v6  ;;  %v403_v4 = vld [vmem:[#allocation2 + $0xb10] sm:$0xff]  ;;  %v46_v5 = vld [vmem:[%s1323_s0 + $0x28] sm:$0xff] }
  0xc1   :  { %983 = vmatpush1.msra.mxu1 %v369_v7  ;;  %913 = vmatprep.subr.mxu0 %v368_v8  ;;  %v338_v6 = vld [vmem:[#allocation2 + $0x908] sm:$0xff]  ;;  %v585_v8 = vcombine.high %v45_v0, %v45_v0 }
  0xc2   :  { %984 = vmatprep.subr.mxu1 %v432_v9  ;;  %914 = vmatpush2.msra.mxu0 %v367_v10  ;;  %v402_v7 = vld [vmem:[#allocation2 + $0xb08] sm:$0xff]  ;;  %v337_v9 = vld [vmem:[#allocation2 + $0x900] sm:$0xff] }
  0xc3   :  { %985 = vmatpush2.msra.mxu1 %v431_v11  ;;  %915 = vmatprep.subr.mxu0 %v366_v12  ;;  %v401_v10 = vld [vmem:[#allocation2 + $0xb00] sm:$0xff]  ;;  %v586_v11 = vcombine.high %v46_v5, %v46_v5  ;;  %v464_v12 = vld [vmem:[#allocation2 + $0xcf8] sm:$0xff] }
  0xc4   :  { %986 = vmatprep.subr.mxu1 %v430_v13  ;;  %916 = vmatpush2.msra.mxu0 %v365_v14  ;;  %v528_v13 = vld [vmem:[#allocation2 + $0xef8] sm:$0xff]  ;;  %v463_v14 = vld [vmem:[#allocation2 + $0xcf0] sm:$0xff] }
  0xc5   :  { %987 = vmatpush2.msra.mxu1 %v429_v15  ;;  %917 = vmatprep.subr.mxu0 %v364_v16  ;;  %v527_v15 = vld [vmem:[#allocation2 + $0xef0] sm:$0xff]  ;;  %v462_v16 = vld [vmem:[#allocation2 + $0xce8] sm:$0xff] }
  0xc6   :  { %988 = vmatprep.subr.mxu1 %v428_v17  ;;  %918 = vmatpush2.msra.mxu0 %v363_v18  ;;  %v526_v17 = vld [vmem:[#allocation2 + $0xee8] sm:$0xff]  ;;  %v461_v18 = vld [vmem:[#allocation2 + $0xce0] sm:$0xff] }
  0xc7   :  { %989 = vmatpush2.msra.mxu1 %v427_v19  ;;  %919 = vmatprep.subr.mxu0 %v362_v20  ;;  %v525_v19 = vld [vmem:[#allocation2 + $0xee0] sm:$0xff]  ;;  %v460_v20 = vld [vmem:[#allocation2 + $0xcd8] sm:$0xff] }
  0xc8   :  { %990 = vmatprep.subr.mxu1 %v426_v21  ;;  %920 = vmatpush2.msra.mxu0 %v361_v22  ;;  %v524_v21 = vld [vmem:[#allocation2 + $0xed8] sm:$0xff]  ;;  %v459_v22 = vld [vmem:[#allocation2 + $0xcd0] sm:$0xff] }
  0xc9   :  { %991 = vmatpush2.msra.mxu1 %v425_v23  ;;  %921 = vmatprep.subr.mxu0 %v360_v24  ;;  %v523_v23 = vld [vmem:[#allocation2 + $0xed0] sm:$0xff]  ;;  %v458_v24 = vld [vmem:[#allocation2 + $0xcc8] sm:$0xff] }
  0xca   :  { %992 = vmatprep.subr.mxu1 %v424_v25  ;;  %922 = vmatpush2.msra.mxu0 %v359_v26  ;;  %v522_v25 = vld [vmem:[#allocation2 + $0xec8] sm:$0xff]  ;;  %v457_v26 = vld [vmem:[#allocation2 + $0xcc0] sm:$0xff] }
  0xcb   :  { %993 = vmatpush2.msra.mxu1 %v423_v27  ;;  %923 = vmatprep.subr.mxu0 %v358_v28  ;;  %v521_v27 = vld [vmem:[#allocation2 + $0xec0] sm:$0xff]  ;;  %v456_v28 = vld [vmem:[#allocation2 + $0xcb8] sm:$0xff] }
  0xcc   :  { %994 = vmatprep.subr.mxu1 %v422_v29  ;;  %924 = vmatpush2.msra.mxu0 %v357_v30  ;;  %v520_v29 = vld [vmem:[#allocation2 + $0xeb8] sm:$0xff]  ;;  %v455_v30 = vld [vmem:[#allocation2 + $0xcb0] sm:$0xff] }
  0xcd   :  { %995 = vmatpush2.msra.mxu1 %v421_v31  ;;  %925 = vmatprep.subr.mxu0 %v356_v32  ;;  %v519_v31 = vld [vmem:[#allocation2 + $0xeb0] sm:$0xff]  ;;  %v454_v32 = vld [vmem:[#allocation2 + $0xca8] sm:$0xff] }
  0xce   :  { %996 = vmatprep.subr.mxu1 %v420_v33  ;;  %926 = vmatpush2.msra.mxu0 %v355_v34  ;;  %v518_v33 = vld [vmem:[#allocation2 + $0xea8] sm:$0xff]  ;;  %v453_v34 = vld [vmem:[#allocation2 + $0xca0] sm:$0xff] }
  0xcf   :  { %997 = vmatpush2.msra.mxu1 %v419_v35  ;;  %927 = vmatprep.subr.mxu0 %v354_v36  ;;  %v517_v35 = vld [vmem:[#allocation2 + $0xea0] sm:$0xff]  ;;  %v452_v36 = vld [vmem:[#allocation2 + $0xc98] sm:$0xff] }
  0xd0   :  { %998 = vmatprep.subr.mxu1 %v418_v37  ;;  %928 = vmatpush2.msra.mxu0 %v353_v38  ;;  %v516_v37 = vld [vmem:[#allocation2 + $0xe98] sm:$0xff]  ;;  %v451_v38 = vld [vmem:[#allocation2 + $0xc90] sm:$0xff] }
  0xd1   :  { %999 = vmatpush2.msra.mxu1 %v417_v39  ;;  %929 = vmatprep.subr.mxu0 %v352_v40  ;;  %v515_v39 = vld [vmem:[#allocation2 + $0xe90] sm:$0xff]  ;;  %v450_v40 = vld [vmem:[#allocation2 + $0xc88] sm:$0xff] }
  0xd2   :  { %1000 = vmatprep.subr.mxu1 %v416_v41  ;;  %930 = vmatpush2.msra.mxu0 %v351_v42  ;;  %v514_v41 = vld [vmem:[#allocation2 + $0xe88] sm:$0xff]  ;;  %v449_v42 = vld [vmem:[#allocation2 + $0xc80] sm:$0xff] }
  0xd3   :  { %1001 = vmatpush2.msra.mxu1 %v415_v43  ;;  %931 = vmatprep.subr.mxu0 %v350_v44  ;;  %v513_v43 = vld [vmem:[#allocation2 + $0xe80] sm:$0xff]  ;;  %v448_v44 = vld [vmem:[#allocation2 + $0xc78] sm:$0xff] }
  0xd4   :  { %1002 = vmatprep.subr.mxu1 %v414_v45  ;;  %932 = vmatpush2.msra.mxu0 %v349_v46  ;;  %v512_v45 = vld [vmem:[#allocation2 + $0xe78] sm:$0xff]  ;;  %v447_v46 = vld [vmem:[#allocation2 + $0xc70] sm:$0xff] }
  0xd5   :  { %1003 = vmatpush2.msra.mxu1 %v413_v47  ;;  %933 = vmatprep.subr.mxu0 %v348_v48  ;;  %v511_v47 = vld [vmem:[#allocation2 + $0xe70] sm:$0xff]  ;;  %v446_v48 = vld [vmem:[#allocation2 + $0xc68] sm:$0xff] }
  0xd6   :  { %1004 = vmatprep.subr.mxu1 %v412_v49  ;;  %934 = vmatpush2.msra.mxu0 %v347_v50  ;;  %v510_v49 = vld [vmem:[#allocation2 + $0xe68] sm:$0xff]  ;;  %v445_v50 = vld [vmem:[#allocation2 + $0xc60] sm:$0xff] }
  0xd7   :  { %1005 = vmatpush2.msra.mxu1 %v411_v51  ;;  %935 = vmatprep.subr.mxu0 %v346_v52  ;;  %v509_v51 = vld [vmem:[#allocation2 + $0xe60] sm:$0xff]  ;;  %v444_v52 = vld [vmem:[#allocation2 + $0xc58] sm:$0xff] }
  0xd8   :  { %1006 = vmatprep.subr.mxu1 %v410_v53  ;;  %936 = vmatpush2.msra.mxu0 %v345_v54  ;;  %v508_v53 = vld [vmem:[#allocation2 + $0xe58] sm:$0xff]  ;;  %v443_v54 = vld [vmem:[#allocation2 + $0xc50] sm:$0xff] }
  0xd9   :  { %1007 = vmatpush2.msra.mxu1 %v409_v55  ;;  %937 = vmatprep.subr.mxu0 %v344_v56  ;;  %v507_v55 = vld [vmem:[#allocation2 + $0xe50] sm:$0xff]  ;;  %v442_v56 = vld [vmem:[#allocation2 + $0xc48] sm:$0xff] }
  0xda   :  { %1008 = vmatprep.subr.mxu1 %v408_v57  ;;  %938 = vmatpush2.msra.mxu0 %v343_v58  ;;  %v506_v57 = vld [vmem:[#allocation2 + $0xe48] sm:$0xff]  ;;  %v441_v58 = vld [vmem:[#allocation2 + $0xc40] sm:$0xff] }
  0xdb   :  { %1009 = vmatpush2.msra.mxu1 %v407_v59  ;;  %939 = vmatprep.subr.mxu0 %v342_v60  ;;  %v505_v59 = vld [vmem:[#allocation2 + $0xe40] sm:$0xff]  ;;  %v440_v60 = vld [vmem:[#allocation2 + $0xc38] sm:$0xff] }
  0xdc   :  { %1010 = vmatprep.subr.mxu1 %v406_v61  ;;  %940 = vmatpush2.msra.mxu0 %v341_v62  ;;  %v504_v61 = vld [vmem:[#allocation2 + $0xe38] sm:$0xff]  ;;  %v439_v62 = vld [vmem:[#allocation2 + $0xc30] sm:$0xff] }
  0xdd   :  { %1011 = vmatpush2.msra.mxu1 %v405_v63  ;;  %941 = vmatprep.subr.mxu0 %v340_v1  ;;  %v503_v63 = vld [vmem:[#allocation2 + $0xe30] sm:$0xff]  ;;  %v502_v1 = vld [vmem:[#allocation2 + $0xe28] sm:$0xff] }
  0xde   :  { %1012 = vmatprep.subr.mxu1 %v404_v2  ;;  %942 = vmatpush2.msra.mxu0 %v339_v3  ;;  %v437_v2 = vld [vmem:[#allocation2 + $0xc20] sm:$0xff] }
  0xdf   :  { %1013 = vmatpush2.msra.mxu1 %v403_v4  ;;  %943 = vmatprep.subr.mxu0 %v338_v6  ;;  %v501_v3 = vld [vmem:[#allocation2 + $0xe20] sm:$0xff]  ;;  %v436_v4 = vld [vmem:[#allocation2 + $0xc18] sm:$0xff]  ;;  %v435_v6 = vld [vmem:[#allocation2 + $0xc10] sm:$0xff] }
  0xe0   :  { %1014 = vmatprep.subr.mxu1 %v402_v7  ;;  %944 = vmatpush2.msra.mxu0 %v337_v9  ;;  %v499_v7 = vld [vmem:[#allocation2 + $0xe10] sm:$0xff]  ;;  %v498_v9 = vld [vmem:[#allocation2 + $0xe08] sm:$0xff] }
  0xe1   :  { %945 = vmatprep.mubr.f32.mxu0 %v585_v8  ;;  %1015 = vmatpush2.msra.mxu1 %v401_v10  ;;  %v434_v8 = vld [vmem:[#allocation2 + $0xc08] sm:$0xff]  ;;  %v433_v10 = vld [vmem:[#allocation2 + $0xc00] sm:$0xff] }
  0xe2   :  { %946 = vmatmul.mubr.f32.vlgmr.msra.gmra.mxu0 %v45_v0  ;;  %1016 = vmatprep.mubr.f32.mxu1 %v586_v11  ;;  %v438_v0 = vld [vmem:[#allocation2 + $0xc28] sm:$0xff]  ;;  %v497_v11 = vld [vmem:[#allocation2 + $0xe00] sm:$0xff] }
  0xe3   :  { %1023 = vmatprep.subr.mxu0 %v464_v12  ;;  %1094 = vmatprep.subr.mxu1 %v528_v13  ;;  %v496_v12 = vld [vmem:[#allocation2 + $0xdf8] sm:$0xff] }
  0xe4   :  { %1017 = vmatmul.mubr.f32.vlgmr.msra.gmra.mxu1 %v46_v5  ;;  %1024 = vmatpush1.msra.mxu0 %v463_v14  ;;  %v500_v5 = vld [vmem:[#allocation2 + $0xe18] sm:$0xff]  ;;  %v495_v14 = vld [vmem:[#allocation2 + $0xdf0] sm:$0xff] }
  0xe5   :  { %1095 = vmatpush1.msra.mxu1 %v527_v15  ;;  %1025 = vmatprep.subr.mxu0 %v462_v16  ;;  %v560_v13 = vld [vmem:[#allocation2 + $0xff8] sm:$0xff]  ;;  %v559_v15 = vld [vmem:[#allocation2 + $0xff0] sm:$0xff]  ;;  %v494_v16 = vld [vmem:[#allocation2 + $0xde8] sm:$0xff] }
  0xe6   :  { %1096 = vmatprep.subr.mxu1 %v526_v17  ;;  %1026 = vmatpush1.msra.mxu0 %v461_v18  ;;  %v558_v17 = vld [vmem:[#allocation2 + $0xfe8] sm:$0xff]  ;;  %v493_v18 = vld [vmem:[#allocation2 + $0xde0] sm:$0xff] }
  0xe7   :  { %1097 = vmatpush1.msra.mxu1 %v525_v19  ;;  %1027 = vmatprep.subr.mxu0 %v460_v20  ;;  %v557_v19 = vld [vmem:[#allocation2 + $0xfe0] sm:$0xff]  ;;  %v492_v20 = vld [vmem:[#allocation2 + $0xdd8] sm:$0xff] }
  0xe8   :  { %1098 = vmatprep.subr.mxu1 %v524_v21  ;;  %1028 = vmatpush1.msra.mxu0 %v459_v22  ;;  %v556_v21 = vld [vmem:[#allocation2 + $0xfd8] sm:$0xff]  ;;  %v491_v22 = vld [vmem:[#allocation2 + $0xdd0] sm:$0xff] }
  0xe9   :  { %1099 = vmatpush1.msra.mxu1 %v523_v23  ;;  %1029 = vmatprep.subr.mxu0 %v458_v24  ;;  %v555_v23 = vld [vmem:[#allocation2 + $0xfd0] sm:$0xff]  ;;  %v490_v24 = vld [vmem:[#allocation2 + $0xdc8] sm:$0xff] }
  0xea   :  { %1100 = vmatprep.subr.mxu1 %v522_v25  ;;  %1030 = vmatpush1.msra.mxu0 %v457_v26  ;;  %v554_v25 = vld [vmem:[#allocation2 + $0xfc8] sm:$0xff]  ;;  %v489_v26 = vld [vmem:[#allocation2 + $0xdc0] sm:$0xff] }
  0xeb   :  { %1101 = vmatpush1.msra.mxu1 %v521_v27  ;;  %1031 = vmatprep.subr.mxu0 %v456_v28  ;;  %v553_v27 = vld [vmem:[#allocation2 + $0xfc0] sm:$0xff]  ;;  %v488_v28 = vld [vmem:[#allocation2 + $0xdb8] sm:$0xff] }
  0xec   :  { %1102 = vmatprep.subr.mxu1 %v520_v29  ;;  %1032 = vmatpush1.msra.mxu0 %v455_v30  ;;  %v552_v29 = vld [vmem:[#allocation2 + $0xfb8] sm:$0xff]  ;;  %v487_v30 = vld [vmem:[#allocation2 + $0xdb0] sm:$0xff] }
  0xed   :  { %1103 = vmatpush1.msra.mxu1 %v519_v31  ;;  %1033 = vmatprep.subr.mxu0 %v454_v32  ;;  %v551_v31 = vld [vmem:[#allocation2 + $0xfb0] sm:$0xff]  ;;  %v486_v32 = vld [vmem:[#allocation2 + $0xda8] sm:$0xff] }
  0xee   :  { %1104 = vmatprep.subr.mxu1 %v518_v33  ;;  %1034 = vmatpush1.msra.mxu0 %v453_v34  ;;  %v550_v33 = vld [vmem:[#allocation2 + $0xfa8] sm:$0xff]  ;;  %v485_v34 = vld [vmem:[#allocation2 + $0xda0] sm:$0xff] }
  0xef   :  { %1105 = vmatpush1.msra.mxu1 %v517_v35  ;;  %1035 = vmatprep.subr.mxu0 %v452_v36  ;;  %v549_v35 = vld [vmem:[#allocation2 + $0xfa0] sm:$0xff]  ;;  %v484_v36 = vld [vmem:[#allocation2 + $0xd98] sm:$0xff] }
  0xf0   :  { %1106 = vmatprep.subr.mxu1 %v516_v37  ;;  %1036 = vmatpush1.msra.mxu0 %v451_v38  ;;  %v548_v37 = vld [vmem:[#allocation2 + $0xf98] sm:$0xff]  ;;  %v483_v38 = vld [vmem:[#allocation2 + $0xd90] sm:$0xff] }
  0xf1   :  { %1107 = vmatpush1.msra.mxu1 %v515_v39  ;;  %1037 = vmatprep.subr.mxu0 %v450_v40  ;;  %v547_v39 = vld [vmem:[#allocation2 + $0xf90] sm:$0xff]  ;;  %v482_v40 = vld [vmem:[#allocation2 + $0xd88] sm:$0xff] }
  0xf2   :  { %1108 = vmatprep.subr.mxu1 %v514_v41  ;;  %1038 = vmatpush1.msra.mxu0 %v449_v42  ;;  %v546_v41 = vld [vmem:[#allocation2 + $0xf88] sm:$0xff]  ;;  %v481_v42 = vld [vmem:[#allocation2 + $0xd80] sm:$0xff] }
  0xf3   :  { %1109 = vmatpush1.msra.mxu1 %v513_v43  ;;  %1039 = vmatprep.subr.mxu0 %v448_v44  ;;  %v545_v43 = vld [vmem:[#allocation2 + $0xf80] sm:$0xff]  ;;  %v480_v44 = vld [vmem:[#allocation2 + $0xd78] sm:$0xff] }
  0xf4   :  { %1110 = vmatprep.subr.mxu1 %v512_v45  ;;  %1040 = vmatpush1.msra.mxu0 %v447_v46  ;;  %v544_v45 = vld [vmem:[#allocation2 + $0xf78] sm:$0xff]  ;;  %v479_v46 = vld [vmem:[#allocation2 + $0xd70] sm:$0xff] }
  0xf5   :  { %1111 = vmatpush1.msra.mxu1 %v511_v47  ;;  %1041 = vmatprep.subr.mxu0 %v446_v48  ;;  %v543_v47 = vld [vmem:[#allocation2 + $0xf70] sm:$0xff]  ;;  %v478_v48 = vld [vmem:[#allocation2 + $0xd68] sm:$0xff] }
  0xf6   :  { %1112 = vmatprep.subr.mxu1 %v510_v49  ;;  %1042 = vmatpush1.msra.mxu0 %v445_v50  ;;  %v542_v49 = vld [vmem:[#allocation2 + $0xf68] sm:$0xff]  ;;  %v477_v50 = vld [vmem:[#allocation2 + $0xd60] sm:$0xff] }
  0xf7   :  { %1113 = vmatpush1.msra.mxu1 %v509_v51  ;;  %1043 = vmatprep.subr.mxu0 %v444_v52  ;;  %v541_v51 = vld [vmem:[#allocation2 + $0xf60] sm:$0xff]  ;;  %v476_v52 = vld [vmem:[#allocation2 + $0xd58] sm:$0xff] }
  0xf8   :  { %1114 = vmatprep.subr.mxu1 %v508_v53  ;;  %1044 = vmatpush1.msra.mxu0 %v443_v54  ;;  %v540_v53 = vld [vmem:[#allocation2 + $0xf58] sm:$0xff]  ;;  %v475_v54 = vld [vmem:[#allocation2 + $0xd50] sm:$0xff] }
  0xf9   :  { %1115 = vmatpush1.msra.mxu1 %v507_v55  ;;  %1045 = vmatprep.subr.mxu0 %v442_v56  ;;  %v539_v55 = vld [vmem:[#allocation2 + $0xf50] sm:$0xff]  ;;  %v474_v56 = vld [vmem:[#allocation2 + $0xd48] sm:$0xff] }
  0xfa   :  { %1116 = vmatprep.subr.mxu1 %v506_v57  ;;  %1046 = vmatpush1.msra.mxu0 %v441_v58  ;;  %v538_v57 = vld [vmem:[#allocation2 + $0xf48] sm:$0xff]  ;;  %v473_v58 = vld [vmem:[#allocation2 + $0xd40] sm:$0xff] }
  0xfb   :  { %1117 = vmatpush1.msra.mxu1 %v505_v59  ;;  %1047 = vmatprep.subr.mxu0 %v440_v60  ;;  %v537_v59 = vld [vmem:[#allocation2 + $0xf40] sm:$0xff]  ;;  %v472_v60 = vld [vmem:[#allocation2 + $0xd38] sm:$0xff] }
  0xfc   :  { %1118 = vmatprep.subr.mxu1 %v504_v61  ;;  %1048 = vmatpush1.msra.mxu0 %v439_v62  ;;  %v536_v61 = vld [vmem:[#allocation2 + $0xf38] sm:$0xff]  ;;  %v471_v62 = vld [vmem:[#allocation2 + $0xd30] sm:$0xff] }
  0xfd   :  { %1119 = vmatpush1.msra.mxu1 %v503_v63  ;;  %1049 = vmatprep.subr.mxu0 %v438_v0  ;;  %v535_v63 = vld [vmem:[#allocation2 + $0xf30] sm:$0xff]  ;;  %v470_v0 = vld [vmem:[#allocation2 + $0xd28] sm:$0xff] }
  0xfe   :  { %1120 = vmatprep.subr.mxu1 %v502_v1  ;;  %1050 = vmatpush1.msra.mxu0 %v437_v2  ;;  %v534_v1 = vld [vmem:[#allocation2 + $0xf28] sm:$0xff]  ;;  %v469_v2 = vld [vmem:[#allocation2 + $0xd20] sm:$0xff] }
  0xff   :  { %1121 = vmatpush1.msra.mxu1 %v501_v3  ;;  %1051 = vmatprep.subr.mxu0 %v436_v4  ;;  %v533_v3 = vld [vmem:[#allocation2 + $0xf20] sm:$0xff]  ;;  %v47_v4 = vld [vmem:[%s1323_s0 + $0x30] sm:$0xff] }
 0x100   :  { %1122 = vmatprep.subr.mxu1 %v500_v5  ;;  %1052 = vmatpush1.msra.mxu0 %v435_v6  ;;  %v468_v5 = vld [vmem:[#allocation2 + $0xd18] sm:$0xff] }
 0x101   :  { %1123 = vmatpush1.msra.mxu1 %v499_v7  ;;  %1053 = vmatprep.subr.mxu0 %v434_v8  ;;  %v532_v6 = vld [vmem:[#allocation2 + $0xf18] sm:$0xff]  ;;  %v467_v8 = vld [vmem:[#allocation2 + $0xd10] sm:$0xff] }
 0x102   :  { %1124 = vmatprep.subr.mxu1 %v498_v9  ;;  %1054 = vmatpush1.msra.mxu0 %v433_v10  ;;  %v48_v7 = vld [vmem:[%s1323_s0 + $0x38] sm:$0xff]  ;;  %v531_v9 = vld [vmem:[#allocation2 + $0xf10] sm:$0xff]  ;;  %v466_v10 = vld [vmem:[#allocation2 + $0xd08] sm:$0xff]  ;;  %s1269_s0 = smov [#allocation7]  }
 0x103   :  { %1125 = vmatpush1.msra.mxu1 %v497_v11  ;;  %1055 = vmatprep.subr.mxu0 %v496_v12  ;;  %v530_v11 = vld [vmem:[#allocation2 + $0xf08] sm:$0xff]  ;;  %v587_v12 = vcombine.high %v47_v4, %v47_v4  ;;  %s1176_s11 = sshll.u32 %s1269_s0, 4  ;;  %s1177_s11 = int_to_ptr.vmem [resolvable:$true] %s1176_s11 }
 0x104   :  { %1126 = vmatprep.subr.mxu1 %v560_v13  ;;  %1056 = vmatpush2.msra.mxu0 %v495_v14  ;;  %v465_v13 = vld [vmem:[#allocation2 + $0xd00] sm:$0xff]  ;;  %v588_v14 = vcombine.high %v48_v7, %v48_v7  ;;  %s1239_s12 = scalar_lea.vmem %s1177_s11, 128  ;;  %p1244_p11 = scmp.lt.s32.totalorder %s1177_s11, %s1177_s11 }
 0x105   :  { %1127 = vmatpush2.msra.mxu1 %v559_v15  ;;  %1057 = vmatprep.subr.mxu0 %v494_v16  ;;  %v529_v15 = vld [vmem:[#allocation2 + $0xf00] sm:$0xff]  ;;  %v563_v16 = vlaneseq  ;;  %p1240_p10 = scmp.ne.s32.totalorder %s1177_s11, %s1239_s12  ;;  %p1245_p12 = scmp.lt.s32.totalorder %s1239_s12, %s1239_s12 }
 0x106   :  { %1128 = vmatprep.subr.mxu1 %v558_v17  ;;  %1058 = vmatpush2.msra.mxu0 %v493_v18 }
 0x107   :  { %1129 = vmatpush2.msra.mxu1 %v557_v19  ;;  %1059 = vmatprep.subr.mxu0 %v492_v20  ;;  %v564_v17 = vshrl.u32 %v563_v16, 7  ;;  %v561_v19 = vld [vmem:[#allocation5] sm:$0x3]  ;;  %p1246_p13 = por %p1245_p12, %p1244_p11 }
 0x108   :  { %1130 = vmatprep.subr.mxu1 %v556_v21  ;;  %1060 = vmatpush2.msra.mxu0 %v491_v22 }
 0x109   :  { %1131 = vmatpush2.msra.mxu1 %v555_v23  ;;  %1061 = vmatprep.subr.mxu0 %v490_v24  ;;  %v565_v18 = vsub.s32 0, %v564_v17  ;;  %v569_v20 = vsub.s32 1, %v564_v17  ;;  %p1247_p0 = pnand %p1246_p13, %p1240_p10 }
 0x10a   :  { %1132 = vmatprep.subr.mxu1 %v554_v25  ;;  %1062 = vmatpush2.msra.mxu0 %v489_v26 }
 0x10b   :  { %1133 = vmatpush2.msra.mxu1 %v553_v27  ;;  %1063 = vmatprep.subr.mxu0 %v488_v28  ;;  %v566_v22 = vrot.slane %v561_v19, %v565_v18  ;;  %v570_v23 = vrot.slane %v561_v19, %v569_v20 }
 0x10c   :  { %1134 = vmatprep.subr.mxu1 %v552_v29  ;;  %1064 = vmatpush2.msra.mxu0 %v487_v30 }
 0x10d   :  { %1135 = vmatpush2.msra.mxu1 %v551_v31  ;;  %1065 = vmatprep.subr.mxu0 %v486_v32 }
 0x10e   :  { %1136 = vmatprep.subr.mxu1 %v550_v33  ;;  %1066 = vmatpush2.msra.mxu0 %v485_v34 }
 0x10f   :  { %1137 = vmatpush2.msra.mxu1 %v549_v35  ;;  %1067 = vmatprep.subr.mxu0 %v484_v36 }
 0x110   :  { %1138 = vmatprep.subr.mxu1 %v548_v37  ;;  %1068 = vmatpush2.msra.mxu0 %v483_v38 }
 0x111   :  { %1139 = vmatpush2.msra.mxu1 %v547_v39  ;;  %1069 = vmatprep.subr.mxu0 %v482_v40 }
 0x112   :  { %1140 = vmatprep.subr.mxu1 %v546_v41  ;;  %1070 = vmatpush2.msra.mxu0 %v481_v42 }
 0x113   :  { %1141 = vmatpush2.msra.mxu1 %v545_v43  ;;  %1071 = vmatprep.subr.mxu0 %v480_v44 }
 0x114   :  { %1142 = vmatprep.subr.mxu1 %v544_v45  ;;  %1072 = vmatpush2.msra.mxu0 %v479_v46 }
 0x115   :  { %1143 = vmatpush2.msra.mxu1 %v543_v47  ;;  %1073 = vmatprep.subr.mxu0 %v478_v48 }
 0x116   :  { %1144 = vmatprep.subr.mxu1 %v542_v49  ;;  %1074 = vmatpush2.msra.mxu0 %v477_v50 }
 0x117   :  { %1145 = vmatpush2.msra.mxu1 %v541_v51  ;;  %1075 = vmatprep.subr.mxu0 %v476_v52 }
 0x118   :  { %1146 = vmatprep.subr.mxu1 %v540_v53  ;;  %1076 = vmatpush2.msra.mxu0 %v475_v54 }
 0x119   :  { %1147 = vmatpush2.msra.mxu1 %v539_v55  ;;  %1077 = vmatprep.subr.mxu0 %v474_v56 }
 0x11a   :  { %1148 = vmatprep.subr.mxu1 %v538_v57  ;;  %1078 = vmatpush2.msra.mxu0 %v473_v58 }
 0x11b   :  { %1149 = vmatpush2.msra.mxu1 %v537_v59  ;;  %1079 = vmatprep.subr.mxu0 %v472_v60 }
 0x11c   :  { %1150 = vmatprep.subr.mxu1 %v536_v61  ;;  %1080 = vmatpush2.msra.mxu0 %v471_v62 }
 0x11d   :  { %1151 = vmatpush2.msra.mxu1 %v535_v63  ;;  %1081 = vmatprep.subr.mxu0 %v470_v0 }
 0x11e   :  { %1152 = vmatprep.subr.mxu1 %v534_v1  ;;  %1082 = vmatpush2.msra.mxu0 %v469_v2  ;;  %v663_v21 = vpop.f32.mrf.mxu0 }
 0x11f   :  { %1153 = vmatpush2.msra.mxu1 %v533_v3  ;;  %1083 = vmatprep.subr.mxu0 %v468_v5  ;;  %v664_v26 = vadd.f32 %v663_v21, %v566_v22 }
 0x120   :  { %1154 = vmatprep.subr.mxu1 %v532_v6  ;;  %1084 = vmatpush2.msra.mxu0 %v467_v8  ;;  %v734_v24 = vpop.f32.mrf.mxu1  ;;  %v665_v25 = vpop.f32.mrf.mxu0 }
 0x121   :  { %1155 = vmatpush2.msra.mxu1 %v531_v9  ;;  %1085 = vmatprep.subr.mxu0 %v466_v10  ;;  %v666_v28 = vadd.f32 %v665_v25, %v570_v23  ;;  %v735_v30 = vadd.f32 %v734_v24, %v664_v26 }
 0x122   :  { %1156 = vmatprep.subr.mxu1 %v530_v11  ;;  %1086 = vmatpush2.msra.mxu0 %v465_v13  ;;  %v736_v29 = vpop.f32.mrf.mxu1 }
 0x123   :  { %1087 = vmatprep.mubr.f32.mxu0 %v587_v12  ;;  %1157 = vmatpush2.msra.mxu1 %v529_v15  ;;  %v737_v33 = vadd.f32 %v736_v29, %v666_v28 }
 0x124   :  { %1158 = vmatprep.mubr.f32.mxu1 %v588_v14  ;;  %1088 = vmatmul.mubr.f32.vlgmr.msra.gmra.mxu0 %v47_v4 }
 0x125   :  { %1159 = vmatmul.mubr.f32.vlgmr.msra.gmra.mxu1 %v48_v7 }
 0x160   :  { %v805_v27 = vpop.f32.mrf.mxu0 }
 0x161   :  { %v806_v34 = vadd.f32 %v805_v27, %v735_v30 }
 0x162   :  { %v876_v31 = vpop.f32.mrf.mxu1  ;;  %v807_v32 = vpop.f32.mrf.mxu0 }
 0x163   :  { %v808_v36 = vadd.f32 %v807_v32, %v737_v33  ;;  %v877_v38 = vadd.f32 %v876_v31, %v806_v34 }
 0x164   :  { %v878_v37 = vpop.f32.mrf.mxu1 }
 0x165   :  { %v879_v41 = vadd.f32 %v878_v37, %v808_v36 }
 0x1a2   :  { %v947_v35 = vpop.f32.mrf.mxu0 }
 0x1a3   :  { %v948_v42 = vadd.f32 %v947_v35, %v877_v38 }
 0x1a4   :  { %v1018_v39 = vpop.f32.mrf.mxu1  ;;  %v949_v40 = vpop.f32.mrf.mxu0 }
 0x1a5   :  { %v950_v43 = vadd.f32 %v949_v40, %v879_v41  ;;  %v1019_v45 = vadd.f32 %v1018_v39, %v948_v42 }
 0x1a6   :  { %v1020_v44 = vpop.f32.mrf.mxu1 }
 0x1a7   :  { %v1021_v48 = vadd.f32 %v1020_v44, %v950_v43 }
 0x1e4   :  { %v1089_v46 = vpop.f32.mrf.mxu0 }
 0x1e5   :  { %v1160_v47 = vpop.f32.mrf.mxu1  ;;  %v1090_v49 = vadd.f32 %v1089_v46, %v1019_v45 }
 0x1e6   :  { %v1091_v50 = vpop.f32.mrf.mxu0 }
 0x1e7   :  { %v1092_v51 = vadd.f32 %v1091_v50, %v1021_v48  ;;  %v1162_v52 = vpop.f32.mrf.mxu1  ;;  %v1161_v53 = vadd.f32 %v1160_v47, %v1090_v49 }
 0x1e9   :  { %v1163_v54 = vadd.f32 %v1162_v52, %v1092_v51 }
 0x1eb   :  { %v1167_v55 = vcombine.low %v1161_v53, %v1163_v54 }
 0x1ed   :  { %1169 = vst [vmem:[#allocation7] sm:$0xff] %v1167_v55 }
 0x1ee   :  { %1250 = shalt.err (!%p1247_p0)
}
 0x1ef   :  { %1179 = dma.vmem_to_hbm [thread:$0]  %s1177_s11, 128, %s1326_s3, [#allocation4]  }
 0x1f0   :  { %1263 = dma.done.wait [#allocation4], 128  }
 0x1f1   :  { %1264 = vsyncadd [#allocation4], 4294967168 }
 0x1f2   :  { %1183 = vsyncpa [#allocation3], 1 }
 0x1f3   :  { %1184 = vsyncpa [#allocation6], 1 }
 0x1f4   :  { %1185 = vsyncpa [#allocation4], 1 }

</bundles_post_ra>
